<compile_context>
chip_gen: v5e
topology: v5e:2x2
jax: 0.10.0
libtpu: 0.0.40
codegen_flags: <defaults>
</compile_context>

<pallas_src>
import math

import jax
import jax.numpy as jnp
from jax.experimental import pallas as pl
from jax.experimental.pallas import tpu as pltpu


def _round_up(n, m):
    return ((n + m - 1) // m) * m


# ----------------------------- Pallas kernel -------------------------------

def dqn_kernel(x_ref, w1_ref, b1_ref,
               w2_ref, b2_ref, e2i_ref, e2o_ref,
               w3_ref, b3_ref, e3i_ref, e3o_ref,
               o_ref):
    # log10(x + 1e-16) in f32 (v5e has no bf16 VPU/EUP); MXU operands bf16, f32 accumulate.
    x = jnp.log10(x_ref[...].astype(jnp.float32) + 1e-16)

    # Layer 1: Linear + ReLU
    h1 = jnp.dot(x.astype(jnp.bfloat16), w1_ref[...],
                 preferred_element_type=jnp.float32) + b1_ref[...]
    h1 = jnp.maximum(h1, 0.0)

    # Layer 2: NoisyLinear.  W_eff = W_mu + sigma*outer(eps_out, eps_in) applied as a
    # rank-1 correction:  h1 @ W_eff^T = h1 @ W_mu^T + (h1 . eps_in) * (sigma*eps_out).
    r2 = jnp.sum(h1 * e2i_ref[...], axis=-1, keepdims=True)          # (TILE_B, 1)
    h2 = (jnp.dot(h1.astype(jnp.bfloat16), w2_ref[...],
                  preferred_element_type=jnp.float32)
          + r2 * e2o_ref[...] + b2_ref[...])
    h2 = jnp.maximum(h2, 0.0)

    # Layer 3: NoisyLinear, no activation.
    r3 = jnp.sum(h2 * e3i_ref[...], axis=-1, keepdims=True)
    o_ref[...] = (jnp.dot(h2.astype(jnp.bfloat16), w3_ref[...],
                          preferred_element_type=jnp.float32)
                  + r3 * e3o_ref[...] + b3_ref[...])


def noisy_dqn_forward(x, kparams, out_dim, *, tile_b=256):
    """x: (B, in_dim) f32.  kparams: padded kernel params from make_params."""
    (w1, b1, w2, b2, e2i, e2o, w3, b3, e3i, e3o) = kparams
    B, in_dim = x.shape
    in_pad, nf_pad = w1.shape
    out_pad = w3.shape[1]

    # Batch tiling: tile is a multiple of 8 sublanes; pad batch to a tile multiple.
    tile_b = min(tile_b, _round_up(B, 8))
    b_pad = _round_up(B, tile_b)
    grid = (b_pad // tile_b,)

    # Lane-dense, zero-padded, bf16 input slab.
    xp = jnp.zeros((b_pad, in_pad), jnp.bfloat16).at[:B, :in_dim].set(
        x.astype(jnp.bfloat16))

    # Weights / biases / noise vectors stay VMEM-resident across the whole grid.
    resident = lambda a: pl.BlockSpec(a.shape, lambda i: (0, 0))

    out = pl.pallas_call(
        dqn_kernel,
        out_shape=jax.ShapeDtypeStruct((b_pad, out_pad), jnp.float32),
        grid=grid,
        in_specs=[
            pl.BlockSpec((tile_b, in_pad), lambda i: (i, 0)),   # streamed x tiles
            resident(w1), resident(b1),
            resident(w2), resident(b2), resident(e2i), resident(e2o),
            resident(w3), resident(b3), resident(e3i), resident(e3o),
        ],
        out_specs=pl.BlockSpec((tile_b, out_pad), lambda i: (i, 0)),
        compiler_params=pltpu.CompilerParams(
            dimension_semantics=("parallel",)),
    )(xp, w1, b1, w2, b2, e2i, e2o, w3, b3, e3i, e3o)

    return out[:B, :out_dim]


# ---------------------- deterministic parameter setup ----------------------

def _scale_noise(key, size):
    # PyTorch: x.sign() * sqrt(|x|), x ~ N(0, 1)
    x = jax.random.normal(key, (size,), dtype=jnp.float32)
    return jnp.sign(x) * jnp.sqrt(jnp.abs(x))


def make_params(key, in_dim, nf, out_dim):
    """Returns (kernel_params, reference_params)."""
    ks = jax.random.split(key, 11)
    in_pad = _round_up(in_dim, 128)
    nf_pad = _round_up(nf, 128)
    out_pad = _round_up(out_dim, 128)

    # --- Layer 1: nn.Linear(in_dim, nf), xavier_uniform_ weight, zero bias ---
    bound1 = math.sqrt(6.0 / (in_dim + nf))
    w1 = jax.random.uniform(ks[0], (nf, in_dim), jnp.float32, -bound1, bound1)
    b1 = jnp.zeros((nf,), jnp.float32)

    # --- Layer 2: NoisyLinear(nf, nf), training mode, factorized noise ---
    std2 = math.sqrt(3.0 / nf)
    w2_mu = jax.random.uniform(ks[1], (nf, nf), jnp.float32, -std2, std2)
    b2_mu = jax.random.uniform(ks[2], (nf,), jnp.float32, -std2, std2)
    w2_sig = 0.5 / math.sqrt(nf)        # weight_sigma fill: std_init / sqrt(in_features)
    b2_sig = 0.5 / math.sqrt(nf)        # bias_sigma fill:   std_init / sqrt(out_features)
    eps2_in = _scale_noise(ks[3], nf)
    eps2_out = _scale_noise(ks[4], nf)
    eps2_b = _scale_noise(ks[5], nf)
    b2_eff = b2_mu + b2_sig * eps2_b

    # --- Layer 3: NoisyLinear(nf, out_dim), training mode, factorized noise ---
    std3 = math.sqrt(3.0 / nf)
    w3_mu = jax.random.uniform(ks[6], (out_dim, nf), jnp.float32, -std3, std3)
    b3_mu = jax.random.uniform(ks[7], (out_dim,), jnp.float32, -std3, std3)
    w3_sig = 0.5 / math.sqrt(nf)
    b3_sig = 0.5 / math.sqrt(out_dim)
    eps3_in = _scale_noise(ks[8], nf)
    eps3_out = _scale_noise(ks[9], out_dim)
    eps3_b = _scale_noise(ks[10], out_dim)
    b3_eff = b3_mu + b3_sig * eps3_b

    # ---- kernel params: (in, out) layout, zero-padded to 128 lanes, bf16 MXU weights ----
    def padw(w_t, rows, cols, dtype):     # w_t: (in, out)
        return jnp.pad(w_t, ((0, rows - w_t.shape[0]),
                             (0, cols - w_t.shape[1]))).astype(dtype)

    def padrow(v, cols, dtype):           # v: (n,) -> (1, cols)
        return jnp.pad(v, (0, cols - v.shape[0]))[None, :].astype(dtype)

    kparams = (
        padw(w1.T, in_pad, nf_pad, jnp.bfloat16),
        padrow(b1, nf_pad, jnp.float32),
        padw(w2_mu.T, nf_pad, nf_pad, jnp.bfloat16),
        padrow(b2_eff, nf_pad, jnp.float32),
        padrow(eps2_in, nf_pad, jnp.float32),
        padrow(w2_sig * eps2_out, nf_pad, jnp.float32),   # sigma folded into eps_out
        padw(w3_mu.T, nf_pad, out_pad, jnp.bfloat16),
        padrow(b3_eff, out_pad, jnp.float32),
        padrow(eps3_in, nf_pad, jnp.float32),
        padrow(w3_sig * eps3_out, out_pad, jnp.float32),
    )

    # ---- full-precision reference params (materialized effective noisy weights) ----
    w2_eff = w2_mu + w2_sig * jnp.outer(eps2_out, eps2_in)   # torch.ger(out, in)
    w3_eff = w3_mu + w3_sig * jnp.outer(eps3_out, eps3_in)
    refparams = (w1.T, b1, w2_eff.T, b2_eff, w3_eff.T, b3_eff)
    return kparams, refparams


# ------------------------------ reference -----------------------------------

def reference_forward(x, w1, b1, w2, b2, w3, b3):
    x = jnp.log10(x + 1e-16)
    h = jnp.maximum(x @ w1 + b1, 0.0)
    h = jnp.maximum(h @ w2 + b2, 0.0)
    return h @ w3 + b3


# --------------------------------- main -------------------------------------

if __name__ == "__main__":
    # HIV-treatment DQN shapes: 6-dim state, 32 hidden units, 4 actions; a replay batch.
    B, IN_DIM, NF, OUT_DIM = 1000, 6, 32, 4

    key = jax.random.PRNGKey(0)
    k_x, k_p = jax.random.split(key)

    # HIV states are positive-valued (log10 is taken in forward); keep inputs positive.
    x = jax.random.uniform(k_x, (B, IN_DIM), jnp.float32, 1e-3, 1e6)

    kparams, refparams = make_params(k_p, IN_DIM, NF, OUT_DIM)

    out = noisy_dqn_forward(x, kparams, OUT_DIM, tile_b=256)
    out = jax.block_until_ready(out)
    assert out.shape == (B, OUT_DIM)

    # f32 reference; tolerance accounts for bf16 MXU operands (f32 accumulate).
    ref = reference_forward(x, *refparams)
    err = float(jnp.max(jnp.abs(out - ref)))
    scale = float(jnp.max(jnp.abs(ref))) + 1e-6
    assert err / scale < 5e-2, f"mismatch vs reference: err={err:.4f}, scale={scale:.4f}"

    print("KERNEL_OK")
</pallas_src>

<mosaic_0001>
module attributes {stable_mosaic.version = 11 : i64} {
  func.func @dqn_kernel(%arg0: i32, %arg1: memref<256x128xbf16, #tpu.memory_space<vmem>>, %arg2: memref<128x128xbf16, #tpu.memory_space<vmem>>, %arg3: memref<1x128xf32, #tpu.memory_space<vmem>>, %arg4: memref<128x128xbf16, #tpu.memory_space<vmem>>, %arg5: memref<1x128xf32, #tpu.memory_space<vmem>>, %arg6: memref<1x128xf32, #tpu.memory_space<vmem>>, %arg7: memref<1x128xf32, #tpu.memory_space<vmem>>, %arg8: memref<128x128xbf16, #tpu.memory_space<vmem>>, %arg9: memref<1x128xf32, #tpu.memory_space<vmem>>, %arg10: memref<1x128xf32, #tpu.memory_space<vmem>>, %arg11: memref<1x128xf32, #tpu.memory_space<vmem>>, %arg12: memref<256x128xf32, #tpu.memory_space<vmem>>) attributes {dimension_semantics = [#tpu.dimension_semantics<parallel>], iteration_bounds = array<i64: 4>, scalar_prefetch = 0 : i64, scratch_operands = 0 : i64, tpu.core_type = #tpu.core_type<tc>, window_params = [{transform_indices = @transform_0, window_bounds = array<i64: 256, 128>}, {pipeline_mode = #tpu.pipeline_mode<synchronous>, transform_indices = @transform_1, window_bounds = array<i64: 128, 128>}, {pipeline_mode = #tpu.pipeline_mode<synchronous>, transform_indices = @transform_2, window_bounds = array<i64: 1, 128>}, {pipeline_mode = #tpu.pipeline_mode<synchronous>, transform_indices = @transform_3, window_bounds = array<i64: 128, 128>}, {pipeline_mode = #tpu.pipeline_mode<synchronous>, transform_indices = @transform_4, window_bounds = array<i64: 1, 128>}, {pipeline_mode = #tpu.pipeline_mode<synchronous>, transform_indices = @transform_5, window_bounds = array<i64: 1, 128>}, {pipeline_mode = #tpu.pipeline_mode<synchronous>, transform_indices = @transform_6, window_bounds = array<i64: 1, 128>}, {pipeline_mode = #tpu.pipeline_mode<synchronous>, transform_indices = @transform_7, window_bounds = array<i64: 128, 128>}, {pipeline_mode = #tpu.pipeline_mode<synchronous>, transform_indices = @transform_8, window_bounds = array<i64: 1, 128>}, {pipeline_mode = #tpu.pipeline_mode<synchronous>, transform_indices = @transform_9, window_bounds = array<i64: 1, 128>}, {pipeline_mode = #tpu.pipeline_mode<synchronous>, transform_indices = @transform_10, window_bounds = array<i64: 1, 128>}, {transform_indices = @transform_11, window_bounds = array<i64: 256, 128>}]} {
    %c0 = arith.constant 0 : index
    %c0_0 = arith.constant 0 : index
    %0 = vector.load %arg1[%c0, %c0_0] : memref<256x128xbf16, #tpu.memory_space<vmem>>, vector<256x128xbf16>
    %1 = arith.extf %0 : vector<256x128xbf16> to vector<256x128xf32>
    %cst = arith.constant 1.000000e-16 : f32
    %2 = vector.broadcast %cst : f32 to vector<256x128xf32>
    %3 = arith.addf %1, %2 : vector<256x128xf32>
    %4 = math.log %3 : vector<256x128xf32>
    %cst_1 = arith.constant 0.434294492 : f32
    %5 = vector.broadcast %cst_1 : f32 to vector<256x128xf32>
    %6 = arith.mulf %4, %5 : vector<256x128xf32>
    %7 = arith.truncf %6 : vector<256x128xf32> to vector<256x128xbf16>
    %c0_2 = arith.constant 0 : index
    %c0_3 = arith.constant 0 : index
    %8 = vector.load %arg2[%c0_2, %c0_3] : memref<128x128xbf16, #tpu.memory_space<vmem>>, vector<128x128xbf16>
    %cst_4 = arith.constant dense<0.000000e+00> : vector<256x128xf32>
    %9 = tpu.matmul %7, %8, %cst_4 {dimension_numbers = #tpu.dot_dimension_numbers<[1], [0], [0], [1], [0, 0, 1, 1], [], []>} : vector<256x128xbf16>, vector<128x128xbf16>, vector<256x128xf32> -> vector<256x128xf32>
    %c0_5 = arith.constant 0 : index
    %c0_6 = arith.constant 0 : index
    %10 = vector.load %arg3[%c0_5, %c0_6] : memref<1x128xf32, #tpu.memory_space<vmem>>, vector<1x128xf32>
    %11 = vector.broadcast %10 : vector<1x128xf32> to vector<256x128xf32>
    %12 = arith.addf %9, %11 : vector<256x128xf32>
    %cst_7 = arith.constant 0.000000e+00 : f32
    %13 = vector.broadcast %cst_7 : f32 to vector<256x128xf32>
    %14 = arith.maximumf %12, %13 : vector<256x128xf32>
    %c0_8 = arith.constant 0 : index
    %c0_9 = arith.constant 0 : index
    %15 = vector.load %arg6[%c0_8, %c0_9] : memref<1x128xf32, #tpu.memory_space<vmem>>, vector<1x128xf32>
    %16 = vector.broadcast %15 : vector<1x128xf32> to vector<256x128xf32>
    %17 = arith.mulf %14, %16 : vector<256x128xf32>
    %cst_10 = arith.constant dense<0.000000e+00> : vector<256xf32>
    %18 = vector.multi_reduction <add>, %17, %cst_10 [1] : vector<256x128xf32> to vector<256xf32>
    %19 = vector.shape_cast %18 : vector<256xf32> to vector<256x1xf32>
    %20 = arith.truncf %14 : vector<256x128xf32> to vector<256x128xbf16>
    %c0_11 = arith.constant 0 : index
    %c0_12 = arith.constant 0 : index
    %21 = vector.load %arg4[%c0_11, %c0_12] : memref<128x128xbf16, #tpu.memory_space<vmem>>, vector<128x128xbf16>
    %cst_13 = arith.constant dense<0.000000e+00> : vector<256x128xf32>
    %22 = tpu.matmul %20, %21, %cst_13 {dimension_numbers = #tpu.dot_dimension_numbers<[1], [0], [0], [1], [0, 0, 1, 1], [], []>} : vector<256x128xbf16>, vector<128x128xbf16>, vector<256x128xf32> -> vector<256x128xf32>
    %c0_14 = arith.constant 0 : index
    %c0_15 = arith.constant 0 : index
    %23 = vector.load %arg7[%c0_14, %c0_15] : memref<1x128xf32, #tpu.memory_space<vmem>>, vector<1x128xf32>
    %24 = vector.broadcast %19 : vector<256x1xf32> to vector<256x128xf32>
    %25 = vector.broadcast %23 : vector<1x128xf32> to vector<256x128xf32>
    %26 = arith.mulf %24, %25 : vector<256x128xf32>
    %27 = arith.addf %22, %26 : vector<256x128xf32>
    %c0_16 = arith.constant 0 : index
    %c0_17 = arith.constant 0 : index
    %28 = vector.load %arg5[%c0_16, %c0_17] : memref<1x128xf32, #tpu.memory_space<vmem>>, vector<1x128xf32>
    %29 = vector.broadcast %28 : vector<1x128xf32> to vector<256x128xf32>
    %30 = arith.addf %27, %29 : vector<256x128xf32>
    %cst_18 = arith.constant 0.000000e+00 : f32
    %31 = vector.broadcast %cst_18 : f32 to vector<256x128xf32>
    %32 = arith.maximumf %30, %31 : vector<256x128xf32>
    %c0_19 = arith.constant 0 : index
    %c0_20 = arith.constant 0 : index
    %33 = vector.load %arg10[%c0_19, %c0_20] : memref<1x128xf32, #tpu.memory_space<vmem>>, vector<1x128xf32>
    %34 = vector.broadcast %33 : vector<1x128xf32> to vector<256x128xf32>
    %35 = arith.mulf %32, %34 : vector<256x128xf32>
    %cst_21 = arith.constant dense<0.000000e+00> : vector<256xf32>
    %36 = vector.multi_reduction <add>, %35, %cst_21 [1] : vector<256x128xf32> to vector<256xf32>
    %37 = vector.shape_cast %36 : vector<256xf32> to vector<256x1xf32>
    %38 = arith.truncf %32 : vector<256x128xf32> to vector<256x128xbf16>
    %c0_22 = arith.constant 0 : index
    %c0_23 = arith.constant 0 : index
    %39 = vector.load %arg8[%c0_22, %c0_23] : memref<128x128xbf16, #tpu.memory_space<vmem>>, vector<128x128xbf16>
    %cst_24 = arith.constant dense<0.000000e+00> : vector<256x128xf32>
    %40 = tpu.matmul %38, %39, %cst_24 {dimension_numbers = #tpu.dot_dimension_numbers<[1], [0], [0], [1], [0, 0, 1, 1], [], []>} : vector<256x128xbf16>, vector<128x128xbf16>, vector<256x128xf32> -> vector<256x128xf32>
    %c0_25 = arith.constant 0 : index
    %c0_26 = arith.constant 0 : index
    %41 = vector.load %arg11[%c0_25, %c0_26] : memref<1x128xf32, #tpu.memory_space<vmem>>, vector<1x128xf32>
    %42 = vector.broadcast %37 : vector<256x1xf32> to vector<256x128xf32>
    %43 = vector.broadcast %41 : vector<1x128xf32> to vector<256x128xf32>
    %44 = arith.mulf %42, %43 : vector<256x128xf32>
    %45 = arith.addf %40, %44 : vector<256x128xf32>
    %c0_27 = arith.constant 0 : index
    %c0_28 = arith.constant 0 : index
    %46 = vector.load %arg9[%c0_27, %c0_28] : memref<1x128xf32, #tpu.memory_space<vmem>>, vector<1x128xf32>
    %47 = vector.broadcast %46 : vector<1x128xf32> to vector<256x128xf32>
    %48 = arith.addf %45, %47 : vector<256x128xf32>
    %c0_29 = arith.constant 0 : index
    %c0_30 = arith.constant 0 : index
    %49 = vector.load %arg12[%c0_29, %c0_30] : memref<256x128xf32, #tpu.memory_space<vmem>>, vector<256x128xf32>
    tpu.vector_store %arg12[%c0_29, %c0_30], %48 {strides = array<i32>} : memref<256x128xf32, #tpu.memory_space<vmem>>, vector<256x128xf32>,
    return
  }
  func.func @transform_0(%arg0: i32) -> (i32, i32) {
    %c0_i32 = arith.constant 0 : i32
    %c0_i32_0 = arith.constant 0 : i32
    return %arg0, %c0_i32 : i32, i32
  }
  func.func @transform_1(%arg0: i32) -> (i32, i32) {
    %c0_i32 = arith.constant 0 : i32
    %c0_i32_0 = arith.constant 0 : i32
    %c0_i32_1 = arith.constant 0 : i32
    return %c0_i32, %c0_i32_0 : i32, i32
  }
  func.func @transform_2(%arg0: i32) -> (i32, i32) {
    %c0_i32 = arith.constant 0 : i32
    %c0_i32_0 = arith.constant 0 : i32
    %c0_i32_1 = arith.constant 0 : i32
    return %c0_i32, %c0_i32_0 : i32, i32
  }
  func.func @transform_3(%arg0: i32) -> (i32, i32) {
    %c0_i32 = arith.constant 0 : i32
    %c0_i32_0 = arith.constant 0 : i32
    %c0_i32_1 = arith.constant 0 : i32
    return %c0_i32, %c0_i32_0 : i32, i32
  }
  func.func @transform_4(%arg0: i32) -> (i32, i32) {
    %c0_i32 = arith.constant 0 : i32
    %c0_i32_0 = arith.constant 0 : i32
    %c0_i32_1 = arith.constant 0 : i32
    return %c0_i32, %c0_i32_0 : i32, i32
  }
  func.func @transform_5(%arg0: i32) -> (i32, i32) {
    %c0_i32 = arith.constant 0 : i32
    %c0_i32_0 = arith.constant 0 : i32
    %c0_i32_1 = arith.constant 0 : i32
    return %c0_i32, %c0_i32_0 : i32, i32
  }
  func.func @transform_6(%arg0: i32) -> (i32, i32) {
    %c0_i32 = arith.constant 0 : i32
    %c0_i32_0 = arith.constant 0 : i32
    %c0_i32_1 = arith.constant 0 : i32
    return %c0_i32, %c0_i32_0 : i32, i32
  }
  func.func @transform_7(%arg0: i32) -> (i32, i32) {
    %c0_i32 = arith.constant 0 : i32
    %c0_i32_0 = arith.constant 0 : i32
    %c0_i32_1 = arith.constant 0 : i32
    return %c0_i32, %c0_i32_0 : i32, i32
  }
  func.func @transform_8(%arg0: i32) -> (i32, i32) {
    %c0_i32 = arith.constant 0 : i32
    %c0_i32_0 = arith.constant 0 : i32
    %c0_i32_1 = arith.constant 0 : i32
    return %c0_i32, %c0_i32_0 : i32, i32
  }
  func.func @transform_9(%arg0: i32) -> (i32, i32) {
    %c0_i32 = arith.constant 0 : i32
    %c0_i32_0 = arith.constant 0 : i32
    %c0_i32_1 = arith.constant 0 : i32
    return %c0_i32, %c0_i32_0 : i32, i32
  }
  func.func @transform_10(%arg0: i32) -> (i32, i32) {
    %c0_i32 = arith.constant 0 : i32
    %c0_i32_0 = arith.constant 0 : i32
    %c0_i32_1 = arith.constant 0 : i32
    return %c0_i32, %c0_i32_0 : i32, i32
  }
  func.func @transform_11(%arg0: i32) -> (i32, i32) {
    %c0_i32 = arith.constant 0 : i32
    %c0_i32_0 = arith.constant 0 : i32
    return %arg0, %c0_i32 : i32, i32
  }
}

</mosaic_0001>

<bundles_post_ra>
// kernel: tpu_custom_call.1
= control target key start
LH: loop header
LB: loop body
LE: loop exit
PB: predicated region body
PF: predicated region fallthrough
CT: control target
= control target key end

     0   :  { %s3078_s0 = inlined_call_operand.hbm [shape: bf16[1024,128], index: 0, kind: input, shape index: {}]   ;;  %s3079_s1 = inlined_call_operand.hbm [shape: bf16[128,128], index: 1, kind: input, shape index: {}]   ;;  %s3080_s2 = inlined_call_operand.vmem [shape: f32[1,128], index: 2, kind: input, shape index: {}]   ;;  %s3081_s3 = inlined_call_operand.hbm [shape: bf16[128,128], index: 3, kind: input, shape index: {}]   ;;  %s3082_s4 = inlined_call_operand.vmem [shape: f32[1,128], index: 4, kind: input, shape index: {}]   ;;  %s3083_s5 = inlined_call_operand.vmem [shape: f32[1,128], index: 5, kind: input, shape index: {}]   ;;  %s3084_s6 = inlined_call_operand.vmem [shape: f32[1,128], index: 6, kind: input, shape index: {}]   ;;  %s3085_s7 = inlined_call_operand.hbm [shape: bf16[128,128], index: 7, kind: input, shape index: {}]   ;;  %s3086_s8 = inlined_call_operand.vmem [shape: f32[1,128], index: 8, kind: input, shape index: {}]   ;;  %s3087_s9 = inlined_call_operand.vmem [shape: f32[1,128], index: 9, kind: input, shape index: {}]   ;;  %s3088_s10 = inlined_call_operand.vmem [shape: f32[1,128], index: 10, kind: input, shape index: {}]   ;;  %s3089_s11 = inlined_call_operand.hbm [shape: f32[1024,128], index: 11, kind: output, shape index: {}]  }
   0x1   :  { %3093 = sst [smem:[#allocation17_spill]] %s3079_s1 }
   0x2   :  { %3094 = sst [smem:[#allocation18_spill]] %s3081_s3 }
   0x3   :  { %3095 = sst [smem:[#allocation19_spill]] %s3085_s7 }
   0x4   :  { %16 = vsyncpa [#allocation3], 0 }
   0x5   :  { %18 = vsyncpa [#allocation3 + $0x1], 0 }
   0x6   :  { %19 = vsyncpa [#allocation6], 0 }
   0x7   :  { %20 = vsyncpa [#allocation9], 0 }
   0x8   :  { %21 = vsyncpa [#allocation4], 0 }
   0x9   :  { %23 = vsyncpa [#allocation4 + $0x1], 0  ;;  %s2380_s17 = smov 0   ;;  %s2382_s18 = smov 0  }
   0xa   :  { %s2384_s19 = smov 0   ;;  %s2386_s20 = smov 0  }
   0xb LB: > { %3096 = sst [smem:[#allocation15_spill]] %s2307_s19  ;;  %s2401_s21 = sadd.s32 4294967295, %s2311_s20   ;;  %s2311_s20 = sphi %s2386_s20, %s3113_s20   ;;  %s2307_s19 = sphi %s2384_s19, %s3110_s19   ;;  %s2303_s18 = sphi %s2382_s18, %s3112_s18   ;;  %s2299_s17 = sphi %s2380_s17, %s3111_s17  }
   0xc   : > { %s1720_s22 = sadd.s32 4294967294, %s2311_s20   ;;  %p49_p0 = scmp.ne.s32.totalorder %s2303_s18, %s2299_s17 }
   0xd   : > { %p50_p1 = scmp.eq.s32.totalorder %s2401_s21, 0  ;;  %p283_p2 = scmp.eq.s32.totalorder %s2401_s21, 3 }
   0xe   : > { %p289_p3 = scmp.eq.s32.totalorder %s1720_s22, 3  ;;  %p1721_p5 = scmp.ge.s32.totalorder %s2311_s20, 1 }
   0xf   : > { %p2410_p4 = por %p50_p1, %p49_p0  ;;  %p296_p7 = scmp.lt.s32.totalorder %s2311_s20, 5 }
  0x10   : > { %p2415_p6 = por %p289_p3, %p49_p0  ;;  %s3099_s1 = sld [smem:[#allocation17_spill]] }
  0x11   : > { %p2423_p8 = pnand %p1721_p5, %p296_p7  ;;  %s2313_s29 = smov [#allocation5]  }
  0x12   : > { %s309_s30 = sshll.u32 %s2313_s29, 4  ;;  %s3102_s3 = sld [smem:[#allocation18_spill]]  ;;  %s310_s30 = int_to_ptr.vmem [resolvable:$true] %s309_s30 }
  0x13   : > { %p1981_p9 = pneg %p2423_p8  ;;  %s3090_s16 = smov 64  }
  0x14   : > { %s3091_s22 = smov 4   ;;  %s2316_s25 = smov [#allocation7]  }
  0x15   : > { %p2431_p10 = pnand %p1981_p9, %p50_p1  ;;  %s326_s26 = sshll.u32 %s2316_s25, 4  ;;  %s327_s26 = int_to_ptr.vmem [resolvable:$true] %s326_s26 }
  0x16   : > { %s307_s27 = sshll.u32 %s3099_s1, 4  ;;  %s3103_s7 = sld [smem:[#allocation19_spill]]  ;;  %s308_s27 = int_to_ptr.hbm [resolvable:$true] %s307_s27 }
  0x17   : > { %1984 = dma.hbm_to_vmem [thread:$0]  (!%p2431_p10), %s308_s27, 1024, %s310_s30, [#allocation6], %s3090_s16, %s3090_s16, %s3091_s22  }
  0x18   : > { %s324_s15 = sshll.u32 %s3102_s3, 4  ;;  %s2317_s27 = smov [#allocation8]   ;;  %s325_s15 = int_to_ptr.hbm [resolvable:$true] %s324_s15 }
  0x19   : > { %1987 = dma.hbm_to_vmem [thread:$0]  (!%p2431_p10), %s325_s15, 1024, %s327_s26, [#allocation6], %s3090_s16, %s3090_s16, %s3091_s22  }
  0x1a   : > { %s349_s30 = sshll.u32 %s2317_s27, 4  ;;  %s2452_s1 = sadd.s32 1, %s2311_s20   ;;  %s350_s30 = int_to_ptr.vmem [resolvable:$true] %s349_s30 }
  0x1b   : > { %s33_s25 = ssub.s32 %s2311_s20, %s2452_s1  ;;  %s36_s29 = sadd.s32 1, %s2307_s19 }
  0x1c   : > { %s347_s14 = sshll.u32 %s3103_s7, 4  ;;  %p34_p11 = scmp.eq.s32.totalorder %s33_s25, 0  ;;  %s348_s14 = int_to_ptr.hbm [resolvable:$true] %s347_s14 }
  0x1d   : > { %1990 = dma.hbm_to_vmem [thread:$0]  (!%p2431_p10), %s348_s14, 1024, %s350_s30, [#allocation9], %s3090_s16, %s3090_s16, %s3091_s22  }
  0x1e   : > { %p43_p12 = scmp.ne.s32.totalorder %s2307_s19, %s2303_s18  ;;  %p44_p13 = scmp.eq.s32.totalorder %s2311_s20, 0 }
  0x1f   : > { %s2466_s13 = scalar_select %p34_p11, %s2307_s19, %s36_s29  }
  0x20   : > { %p2470_p0 = por %p283_p2, %p43_p12  ;;  %p2002_p3 = scmp.lt.s32.totalorder %s2311_s20, 4 }
  0x21   : > { %3104 = sst [smem:[#allocation16_spill]] %s2466_s13  ;;  %s372_s26 = sand.u32 1, %s2307_s19  }
  0x22   : > { %s1836_s12 = sshll.u32 %s2311_s20, 7  ;;  %p45_p5 = por %p44_p13, %p43_p12 }
  0x23   : > { %s1726_s27 = sshll.u32 %s372_s26, 7  ;;  %s381_s14 = scalar_lea.hbm %s3078_s0, %s1836_s12 }
  0x24   : > { %s382_s30 = sshll.u32 %s381_s14, 4  ;;  %s376_s25 = scalar_lea.vmem [#allocation2], %s1726_s27  ;;  %s383_s30 = int_to_ptr.hbm [resolvable:$true] %s382_s30 }
  0x25   : > { %s384_s16 = sshll.u32 %s376_s25, 4  ;;  %p2480_p7 = pnand %p2002_p3, %p45_p5  ;;  %s385_s16 = int_to_ptr.vmem [resolvable:$true] %s384_s16 }
  0x26   : > { %s373_s22 = scalar_lea.sflag [#allocation3], %s372_s26  ;;  %s2207_s13 = sshra.s32 %s383_s30, 4  ;;  %s2208_s13 = int_to_ptr.hbm [resolvable:$true] %s2207_s13 }
  0x27   : > { %s2209_s19 = scalar_lea.hbm %s2208_s13, 128  ;;  %p2211_p9 = pneg %p2480_p7 }
  0x28   : > { %p2210_p2 = scmp.ne.s32.totalorder %s2208_s13, %s2209_s19  ;;  %s2214_s12 = scalar_lea.hbm %s3078_s0, 512 }
  0x29   : > { %p2215_p12 = scmp.lt.s32.totalorder %s2208_s13, %s3078_s0  ;;  %p2216_p13 = scmp.lt.s32.totalorder %s2214_s12, %s2209_s19 }
  0x2a   : > { %p2212_p10 = pnand %p2211_p9, %p2210_p2 }
  0x2b   : > { %p2217_p3 = por %p2216_p13, %p2215_p12 }
  0x2c   : > { %p2213_p11 = pneg %p2212_p10 }
  0x2e   : > { %p2218_p5 = pnand %p2217_p3, %p2213_p11 }
  0x30   : > { %2221 = shalt.err (!%p2218_p5)
}
  0x31   : > { %s3107_s26 = smov 4   ;;  %s3108_s25 = smov 64  }
  0x32   : > { %1994 = dma.hbm_to_vmem [thread:$0]  (!%p2480_p7), %s383_s30, 2048, %s385_s16, %s373_s22, %s3108_s25, %s3108_s25, %s3107_s26  }
  0x33   : > { %396 = sbr.rel (%p2423_p8) target bundleno = 700 (0x2bc), region = 64  ;;  %s2500_s3 = sand.u32 (!%p2423_p8), 1, %s2303_s18  }
  0x34   : > { %s1730_s13 = sshll.u32 (!%p2423_p8), %s2500_s3, 7  ;;  %s399_s19 = scalar_lea.sflag (!%p2423_p8), [#allocation3], %s2500_s3 }
  0x35   : > { %s2504_s7 = scalar_lea.vmem (!%p2423_p8), [#allocation2], %s1730_s13 }
  0x38   : > { %2282 = dma.done.wait (%p2410_p4), %s399_s19, 2048  }
  0x39   : > { %2284 = vsyncadd (%p2410_p4), %s399_s19, 4294965248 }
  0x3a   : > { %2286 = dma.done.wait (%p50_p1), [#allocation6], 2048  }
  0x3b   : > { %2288 = vsyncadd (%p50_p1), [#allocation6], 4294965248 }
  0x3c   : > { %2290 = dma.done.wait (%p50_p1), [#allocation9], 1024  }
  0x3d   : > { %2292 = vsyncadd (%p50_p1), [#allocation9], 4294966272  ;;  %v1844_v0 = vld [vmem:[#allocation5 + $0x38] sm:$0xff]  ;;  %v1843_v1 = vld [vmem:[#allocation5 + $0x30] sm:$0xff]  ;;  %s1734_s19 = sshll.u32 %s2500_s3, 8  ;;  %s1861_s16 = sshll.u32 %s2401_s21, 8 }
  0x3e   : > { %735 = vmatpush.bf16.msra.mxu0 %v1844_v0  ;;  %v1863_v2 = vld [vmem:[%s2504_s7] sm:$0xff]   ;;  %1941 = vmatpush.bf16.msra.mxu3 %v1844_v0  ;;  %v1842_v5 = vld [vmem:[#allocation5 + $0x28] sm:$0xff]  ;;  %v1840_v9 = vld [vmem:[#allocation5 + $0x18] sm:$0xff]  ;;  %s2899_s28 = scalar_lea.vmem [#allocation10], %s1734_s19  ;;  %s1614_s29 = scalar_lea.hbm %s3089_s11, %s1861_s16 }
  0x3f   : > { %v1864_v3 = vunpack.c.l.bf16 %v1863_v2  ;;  %v1865_v4 = vunpack.c.h.bf16 %v1863_v2  ;;  %v1841_v8 = vld [vmem:[#allocation5 + $0x20] sm:$0xff]  ;;  %v1926_v10 = vld [vmem:[%s2504_s7 + $0x8] sm:$0xff]   ;;  %v1839_v13 = vld [vmem:[#allocation5 + $0x10] sm:$0xff]  ;;  %s1615_s21 = sshll.u32 %s2899_s28, 4  ;;  %s1617_s12 = sshll.u32 %s1614_s29, 4  ;;  %s1616_s21 = int_to_ptr.vmem [resolvable:$true] %s1615_s21  ;;  %s1618_s12 = int_to_ptr.hbm [resolvable:$true] %s1617_s12 }
  0x40   : > { %v1868_v14 = vunpack.c.l.bf16 %v1926_v10  ;;  %v1869_v15 = vunpack.c.h.bf16 %v1926_v10  ;;  %v1838_v18 = vld [vmem:[#allocation5 + $0x8] sm:$0xff]  ;;  %v1837_v23 = vld [vmem:[#allocation5] sm:$0xff]  ;;  %v1927_v25 = vld [vmem:[%s2504_s7 + $0x10] sm:$0xff]   ;;  %s1603_s27 = scalar_lea.sflag [#allocation4], %s2500_s3  ;;  %s2251_s14 = sshra.s32 %s1618_s12, 4  ;;  %s2252_s14 = int_to_ptr.hbm [resolvable:$true] %s2251_s14 }
  0x41   : > { %v523_v6 = vadd.f32 1e-16, %v1864_v3  ;;  %v524_v7 = vadd.f32 1e-16, %v1865_v4  ;;  %v1872_v28 = vunpack.c.l.bf16 %v1927_v25  ;;  %v1873_v29 = vunpack.c.h.bf16 %v1927_v25  ;;  %v1928_v37 = vld [vmem:[%s2504_s7 + $0x18] sm:$0xff]   ;;  %v1929_v49 = vld [vmem:[%s2504_s7 + $0x20] sm:$0xff]   ;;  %p2258_p7 = scmp.lt.s32.totalorder %s2252_s14, %s3089_s11 }
  0x42   : > { %736 = vmatpush.bf16.msra.mxu0 %v1843_v1  ;;  %1942 = vmatpush.bf16.msra.mxu3 %v1843_v1  ;;  %v525_v19 = vadd.f32 1e-16, %v1868_v14  ;;  %v526_v20 = vadd.f32 1e-16, %v1869_v15  ;;  %v1876_v40 = vunpack.c.l.bf16 %v1928_v37  ;;  %v1877_v41 = vunpack.c.h.bf16 %v1928_v37  ;;  %v1937_v60 = vld [vmem:[%s2504_s7 + $0x60] sm:$0xff]   ;;  %v1930_v2 = vld [vmem:[%s2504_s7 + $0x28] sm:$0xff]  }
  0x43   : > { %2053 = vlog2.f32 %v523_v6  ;;  %v527_v32 = vadd.f32 1e-16, %v1872_v28  ;;  %v528_v33 = vadd.f32 1e-16, %v1873_v29  ;;  %v1880_v52 = vunpack.c.l.bf16 %v1929_v49  ;;  %v1852_v28 = vld [vmem:[#allocation7 + $0x38] sm:$0xff]  ;;  %s2253_s26 = scalar_lea.hbm %s2252_s14, 256 }
  0x44   : > { %2055 = vlog2.f32 %v524_v7  ;;  %v529_v44 = vadd.f32 1e-16, %v1876_v40  ;;  %v530_v45 = vadd.f32 1e-16, %v1877_v41  ;;  %v1881_v53 = vunpack.c.h.bf16 %v1929_v49  ;;  %1072 = vmatpush.bf16.msra.mxu1 %v1852_v28  ;;  %p2254_p1 = scmp.ne.s32.totalorder %s2252_s14, %s2253_s26  ;;  %s2257_s19 = scalar_lea.hbm %s3089_s11, 1024 }
  0x45   : > { %2057 = vlog2.f32 %v525_v19  ;;  %v531_v56 = vadd.f32 1e-16, %v1880_v52  ;;  %v1912_v61 = vunpack.c.l.bf16 %v1937_v60  ;;  %v1913_v62 = vunpack.c.h.bf16 %v1937_v60  ;;  %v1938_v19 = vld [vmem:[%s2504_s7 + $0x68] sm:$0xff]   ;;  %v1851_v52 = vld [vmem:[#allocation7 + $0x30] sm:$0xff]  ;;  %p2259_p2 = scmp.lt.s32.totalorder %s2257_s19, %s2253_s26 }
  0x46   : > { %737 = vmatpush.bf16.msra.mxu0 %v1842_v5  ;;  %1943 = vmatpush.bf16.msra.mxu3 %v1842_v5  ;;  %2059 = vlog2.f32 %v526_v20  ;;  %v532_v57 = vadd.f32 1e-16, %v1881_v53  ;;  %v1884_v5 = vunpack.c.l.bf16 %v1930_v2  ;;  %v1885_v7 = vunpack.c.h.bf16 %v1930_v2  ;;  %p2255_p4 = pnand %p2254_p1, %p2470_p0 }
  0x47   : > { %2061 = vlog2.f32 %v527_v32  ;;  %v547_v63 = vadd.f32 1e-16, %v1912_v61  ;;  %v548_v0 = vadd.f32 1e-16, %v1913_v62  ;;  %p2260_p9 = por %p2259_p2, %p2258_p7 }
  0x48   : > { %2063 = vlog2.f32 %v528_v33  ;;  %v534_v15 = vadd.f32 1e-16, %v1885_v7  ;;  %1073 = vmatpush.bf16.msra.mxu1 %v1851_v52  ;;  %p2256_p8 = pneg %p2255_p4 }
  0x49   : > { %v2054_v11 = vpop.eup %2053  ;;  %2065 = vlog2.f32 %v529_v44  ;;  %v1939_v44 = vld [vmem:[%s2504_s7 + $0x70] sm:$0xff]  }
  0x4a   : > { %738 = vmatpush.bf16.msra.mxu0 %v1841_v8  ;;  %1944 = vmatpush.bf16.msra.mxu3 %v1841_v8  ;;  %v2056_v12 = vpop.eup %2055  ;;  %v556_v16 = vmul.f32 0.6931472, %v2054_v11  ;;  %2067 = vlog2.f32 %v530_v45  ;;  %p2261_p10 = pnand %p2260_p9, %p2256_p8 }
  0x4b   : > { %v558_v17 = vmul.f32 0.6931472, %v2056_v12  ;;  %v2058_v26 = vpop.eup %2057  ;;  %2069 = vlog2.f32 %v531_v56 }
  0x4c   : > { %v619_v21 = vmul.f32 0.4342945, %v556_v16  ;;  %v2060_v27 = vpop.eup %2059  ;;  %v560_v30 = vmul.f32 0.6931472, %v2058_v26  ;;  %2071 = vlog2.f32 %v532_v57  ;;  %v1931_v26 = vld [vmem:[%s2504_s7 + $0x30] sm:$0xff]  }
  0x4d   : > { %v620_v22 = vmul.f32 0.4342945, %v558_v17  ;;  %v562_v31 = vmul.f32 0.6931472, %v2060_v27  ;;  %v2062_v38 = vpop.eup %2061  ;;  %2073 = vlog2.f32 %v547_v63  ;;  %v1889_v32 = vunpack.c.h.bf16 %v1931_v26  ;;  %v1849_v63 = vld [vmem:[#allocation7 + $0x20] sm:$0xff] }
  0x4e   : > { %739 = vmatpush.bf16.msra.mxu0 %v1840_v9  ;;  %1945 = vmatpush.bf16.msra.mxu3 %v1840_v9  ;;  %v621_v34 = vmul.f32 0.4342945, %v560_v30  ;;  %v2064_v39 = vpop.eup %2063  ;;  %v564_v42 = vmul.f32 0.6931472, %v2062_v38  ;;  %2075 = vlog2.f32 %v548_v0  ;;  %v1888_v30 = vunpack.c.l.bf16 %v1931_v26  ;;  %v1845_v26 = vld [vmem:[#allocation7] sm:$0xff] }
  0x4f   : > { %v651_v24 = vpack.c.bf16 %v620_v22, %v619_v21  ;;  %v622_v35 = vmul.f32 0.4342945, %v562_v31  ;;  %v566_v43 = vmul.f32 0.6931472, %v2064_v39  ;;  %v2066_v50 = vpop.eup %2065  ;;  %v1916_v21 = vunpack.c.l.bf16 %v1938_v19 }
  0x50   : > { %v623_v46 = vmul.f32 0.4342945, %v564_v42  ;;  %v2068_v51 = vpop.eup %2067  ;;  %v568_v54 = vmul.f32 0.6931472, %v2066_v50  ;;  %v1917_v22 = vunpack.c.h.bf16 %v1938_v19  ;;  %v535_v38 = vadd.f32 1e-16, %v1888_v30 }
  0x51   : > { %v652_v36 = vpack.c.bf16 %v622_v35, %v621_v34  ;;  %v624_v47 = vmul.f32 0.4342945, %v566_v43  ;;  %v570_v55 = vmul.f32 0.6931472, %v2068_v51  ;;  %v2070_v3 = vpop.eup %2069  ;;  %v536_v40 = vadd.f32 1e-16, %v1889_v32 }
  0x52   : > { %740 = vmatpush.bf16.msra.mxu0 %v1839_v13  ;;  %1946 = vmatpush.bf16.msra.mxu3 %v1839_v13  ;;  %v625_v58 = vmul.f32 0.4342945, %v568_v54  ;;  %v2072_v4 = vpop.eup %2071  ;;  %v572_v9 = vmul.f32 0.6931472, %v2070_v3  ;;  %v533_v13 = vadd.f32 1e-16, %v1884_v5 }
  0x53   : > { %v653_v48 = vpack.c.bf16 %v624_v47, %v623_v46  ;;  %v626_v59 = vmul.f32 0.4342945, %v570_v55  ;;  %v2074_v6 = vpop.eup %2073  ;;  %v574_v10 = vmul.f32 0.6931472, %v2072_v4  ;;  %v1920_v46 = vunpack.c.l.bf16 %v1939_v44  ;;  %v1932_v51 = vld [vmem:[%s2504_s7 + $0x38] sm:$0xff]   ;;  %v1850_v55 = vld [vmem:[#allocation7 + $0x28] sm:$0xff] }
  0x54   : > { %v2076_v8 = vpop.eup %2075  ;;  %v604_v11 = vmul.f32 0.6931472, %v2074_v6  ;;  %v627_v17 = vmul.f32 0.4342945, %v572_v9  ;;  %2077 = vlog2.f32 %v533_v13  ;;  %v1921_v47 = vunpack.c.h.bf16 %v1939_v44  ;;  %1074 = vmatpush.bf16.msra.mxu1 %v1850_v55 }
  0x55   : > { %v654_v1 = vpack.c.bf16 %v626_v59, %v625_v58  ;;  %v606_v12 = vmul.f32 0.6931472, %v2076_v8  ;;  %2079 = vlog2.f32 %v534_v15  ;;  %v1892_v56 = vunpack.c.l.bf16 %v1932_v51  ;;  %v1848_v8 = vld [vmem:[#allocation7 + $0x18] sm:$0xff] }
  0x56   : > { %741 = vmatpush.bf16.msra.mxu0 %v1838_v18  ;;  %1947 = vmatpush.bf16.msra.mxu3 %v1838_v18  ;;  %v643_v14 = vmul.f32 0.4342945, %v604_v11  ;;  %v628_v18 = vmul.f32 0.4342945, %v574_v10  ;;  %v552_v49 = vadd.f32 1e-16, %v1921_v47  ;;  %v1893_v58 = vunpack.c.h.bf16 %v1932_v51 }
  0x57   : > { %v644_v16 = vmul.f32 0.4342945, %v606_v12  ;;  %v1933_v10 = vld [vmem:[%s2504_s7 + $0x40] sm:$0xff]   ;;  %v1847_v11 = vld [vmem:[#allocation7 + $0x10] sm:$0xff]  ;;  %v1940_v15 = vld [vmem:[%s2504_s7 + $0x78] sm:$0xff]  }
  0x58   : > { %v655_v25 = vpack.c.bf16 %v628_v18, %v627_v17  ;;  %v538_v3 = vadd.f32 1e-16, %v1893_v58  ;;  %1075 = vmatpush.bf16.msra.mxu1 %v1849_v63  ;;  %v1846_v17 = vld [vmem:[#allocation7 + $0x8] sm:$0xff]  ;;  %v1924_v18 = vunpack.c.l.bf16 %v1940_v15  ;;  %v1925_v19 = vunpack.c.h.bf16 %v1940_v15 }
  0x59   : > { %v663_v20 = vpack.c.bf16 %v644_v16, %v643_v14  ;;  %v1896_v14 = vunpack.c.l.bf16 %v1933_v10  ;;  %v1897_v16 = vunpack.c.h.bf16 %v1933_v10  ;;  %v1936_v10 = vld [vmem:[%s2504_s7 + $0x58] sm:$0xff]  }
  0x5a   : > { %742 = vmatpush.bf16.msra.mxu0 %v1837_v23  ;;  %1948 = vmatpush.bf16.msra.mxu3 %v1837_v23  ;;  %v549_v23 = vadd.f32 1e-16, %v1916_v21  ;;  %v2078_v27 = vpop.eup %2077  ;;  %v1908_v15 = vunpack.c.l.bf16 %v1936_v10 }
  0x5b   : > { %v2080_v29 = vpop.eup %2079  ;;  %v576_v34 = vmul.f32 0.6931472, %v2078_v27 }
  0x5c   : > { %2081 = vlog2.f32 %v549_v23  ;;  %v578_v35 = vmul.f32 0.6931472, %v2080_v29  ;;  %1076 = vmatpush.bf16.msra.mxu1 %v1848_v8  ;;  %v554_v23 = vadd.f32 1e-16, %v1925_v19 }
  0x5d   : > { %743 = vmatmul.bf16.vlgmr.msra.gmra.mxu0 %v651_v24  ;;  %803 = vmatmul.bf16.vlgmr.msra.gmra.mxu3 %v663_v20  ;;  %v550_v24 = vadd.f32 1e-16, %v1917_v22  ;;  %v629_v42 = vmul.f32 0.4342945, %v576_v34  ;;  %v553_v22 = vadd.f32 1e-16, %v1924_v18 }
  0x5e   : > { %1949 = vmatpush.bf16.msrb.mxu3 %v1852_v28  ;;  %v630_v43 = vmul.f32 0.4342945, %v578_v35 }
  0x5f   : > { %2083 = vlog2.f32 %v550_v24  ;;  %v539_v24 = vadd.f32 1e-16, %v1896_v14 }
  0x60   : > { %2085 = vlog2.f32 %v535_v38  ;;  %v656_v50 = vpack.c.bf16 %v630_v43, %v629_v42  ;;  %1077 = vmatpush.bf16.msra.mxu1 %v1847_v11 }
  0x61   : > { %2087 = vlog2.f32 %v536_v40 }
  0x62   : > { %v2082_v31 = vpop.eup %2081  ;;  %1950 = vmatpush.bf16.msrb.mxu3 %v1851_v52  ;;  %v2541_v52 = vld [vmem:[%s3083_s5] ss:$0 sm:$0xff] }
  0x64   : > { %1078 = vmatpush.bf16.msra.mxu1 %v1846_v17 }
  0x65   : > { %v2084_v33 = vpop.eup %2083 }
  0x66   : > { %v610_v37 = vmul.f32 0.6931472, %v2084_v33  ;;  %v2086_v53 = vpop.eup %2085  ;;  %1951 = vmatpush.bf16.msrb.mxu3 %v1850_v55  ;;  %v1934_v33 = vld [vmem:[%s2504_s7 + $0x48] sm:$0xff]  }
  0x67   : > { %v2088_v54 = vpop.eup %2087  ;;  %v580_v60 = vmul.f32 0.6931472, %v2086_v53  ;;  %v1901_v40 = vunpack.c.h.bf16 %v1934_v33  ;;  %v1935_v53 = vld [vmem:[%s2504_s7 + $0x50] sm:$0xff]  }
  0x68   : > { %v646_v41 = vmul.f32 0.4342945, %v610_v37  ;;  %v582_v61 = vmul.f32 0.6931472, %v2088_v54  ;;  %1079 = vmatpush.bf16.msra.mxu1 %v1845_v26  ;;  %v1904_v58 = vunpack.c.l.bf16 %v1935_v53 }
  0x69   : > { %v631_v5 = vmul.f32 0.4342945, %v580_v60 }
  0x6a   : > { %v632_v6 = vmul.f32 0.4342945, %v582_v61  ;;  %1952 = vmatpush.bf16.msrb.mxu3 %v1849_v63 }
  0x6c   : > { %v657_v9 = vpack.c.bf16 %v632_v6, %v631_v5 }
  0x6d   : > { %748 = vmatmul.bf16.gmra.mxu0 %v652_v36  ;;  %v608_v36 = vmul.f32 0.6931472, %v2082_v31 }
  0x6e   : > { %1953 = vmatpush.bf16.msrb.mxu3 %v1848_v8 }
  0x6f   : > { %v645_v39 = vmul.f32 0.4342945, %v608_v36 }
  0x71   : > { %v664_v45 = vpack.c.bf16 %v646_v41, %v645_v39  ;;  %v1900_v39 = vunpack.c.l.bf16 %v1934_v33 }
  0x72   : > { %1954 = vmatpush.bf16.msrb.mxu3 %v1847_v11 }
  0x73   : > { %808 = vmatmul.bf16.gmra.mxu3 %v664_v45  ;;  %v541_v44 = vadd.f32 1e-16, %v1900_v39  ;;  %v542_v45 = vadd.f32 1e-16, %v1901_v40 }
  0x76   : > { %1955 = vmatpush.bf16.msrb.mxu3 %v1846_v17 }
  0x7a   : > { %1956 = vmatpush.bf16.msrb.mxu3 %v1845_v26 }
  0x7d   : > { %753 = vmatmul.bf16.gmra.mxu0 %v653_v48  ;;  %v551_v48 = vadd.f32 1e-16, %v1920_v46 }
  0x7f   : > { %2089 = vlog2.f32 %v551_v48  ;;  %v2535_v48 = vld [vmem:[%s3080_s2] ss:$0 sm:$0xff] }
  0x80   : > { %2091 = vlog2.f32 %v552_v49 }
  0x85   : > { %v2090_v57 = vpop.eup %2089 }
  0x86   : > { %v2092_v59 = vpop.eup %2091  ;;  %v612_v62 = vmul.f32 0.6931472, %v2090_v57 }
  0x87   : > { %v614_v0 = vmul.f32 0.6931472, %v2092_v59  ;;  %v1905_v59 = vunpack.c.h.bf16 %v1935_v53 }
  0x88   : > { %v647_v2 = vmul.f32 0.4342945, %v612_v62 }
  0x89   : > { %v648_v4 = vmul.f32 0.4342945, %v614_v0  ;;  %v543_v0 = vadd.f32 1e-16, %v1904_v58 }
  0x8b   : > { %v665_v7 = vpack.c.bf16 %v648_v4, %v647_v2 }
  0x8d   : > { %758 = vmatmul.bf16.gmra.mxu0 %v654_v1  ;;  %v537_v1 = vadd.f32 1e-16, %v1892_v56  ;;  %813 = vmatmul.bf16.gmra.mxu3 %v665_v7 }
  0x8f   : > { %2093 = vlog2.f32 %v537_v1  ;;  %v544_v1 = vadd.f32 1e-16, %v1905_v59 }
  0x90   : > { %2095 = vlog2.f32 %v538_v3 }
  0x91   : > { %2097 = vlog2.f32 %v553_v22 }
  0x92   : > { %2099 = vlog2.f32 %v554_v23 }
  0x93   : > { %2101 = vlog2.f32 %v539_v24 }
  0x95   : > { %v2094_v12 = vpop.eup %2093 }
  0x96   : > { %v2096_v13 = vpop.eup %2095  ;;  %v584_v20 = vmul.f32 0.6931472, %v2094_v12 }
  0x97   : > { %v586_v21 = vmul.f32 0.6931472, %v2096_v13  ;;  %v2098_v30 = vpop.eup %2097 }
  0x98   : > { %v633_v27 = vmul.f32 0.4342945, %v584_v20  ;;  %v2100_v31 = vpop.eup %2099  ;;  %v616_v32 = vmul.f32 0.6931472, %v2098_v30 }
  0x99   : > { %v634_v28 = vmul.f32 0.4342945, %v586_v21  ;;  %v618_v34 = vmul.f32 0.6931472, %v2100_v31  ;;  %v2102_v35 = vpop.eup %2101  ;;  %v545_v21 = vadd.f32 1e-16, %v1908_v15 }
  0x9a   : > { %v649_v36 = vmul.f32 0.4342945, %v616_v32  ;;  %v588_v42 = vmul.f32 0.6931472, %v2102_v35 }
  0x9b   : > { %v658_v29 = vpack.c.bf16 %v634_v28, %v633_v27  ;;  %v650_v38 = vmul.f32 0.4342945, %v618_v34 }
  0x9c   : > { %v635_v46 = vmul.f32 0.4342945, %v588_v42 }
  0x9d   : > { %763 = vmatmul.bf16.gmra.mxu0 %v655_v25  ;;  %v540_v25 = vadd.f32 1e-16, %v1897_v16  ;;  %v666_v41 = vpack.c.bf16 %v650_v38, %v649_v36  ;;  %v1909_v16 = vunpack.c.h.bf16 %v1936_v10 }
  0x9f   : > { %2103 = vlog2.f32 %v540_v25  ;;  %818 = vmatmul.bf16.gmra.mxu3 %v666_v41  ;;  %v546_v22 = vadd.f32 1e-16, %v1909_v16 }
  0xa0   : > { %2105 = vlog2.f32 %v541_v44 }
  0xa1   : > { %2107 = vlog2.f32 %v542_v45 }
  0xa2   : > { %2109 = vlog2.f32 %v543_v0 }
  0xa3   : > { %2111 = vlog2.f32 %v544_v1 }
  0xa4   : > { %2113 = vlog2.f32 %v545_v21 }
  0xa5   : > { %v2104_v37 = vpop.eup %2103  ;;  %2115 = vlog2.f32 %v546_v22 }
  0xa6   : > { %v590_v43 = vmul.f32 0.6931472, %v2104_v37  ;;  %v2106_v54 = vpop.eup %2105 }
  0xa7   : > { %v2108_v56 = vpop.eup %2107  ;;  %v592_v60 = vmul.f32 0.6931472, %v2106_v54 }
  0xa8   : > { %v636_v47 = vmul.f32 0.4342945, %v590_v43  ;;  %v594_v61 = vmul.f32 0.6931472, %v2108_v56  ;;  %v2110_v11 = vpop.eup %2109 }
  0xa9   : > { %v637_v3 = vmul.f32 0.4342945, %v592_v60  ;;  %v2112_v13 = vpop.eup %2111  ;;  %v596_v17 = vmul.f32 0.6931472, %v2110_v11 }
  0xaa   : > { %v659_v49 = vpack.c.bf16 %v636_v47, %v635_v46  ;;  %v638_v4 = vmul.f32 0.4342945, %v594_v61  ;;  %v598_v18 = vmul.f32 0.6931472, %v2112_v13  ;;  %v2114_v31 = vpop.eup %2113 }
  0xab   : > { %v639_v24 = vmul.f32 0.4342945, %v596_v17  ;;  %v2116_v33 = vpop.eup %2115  ;;  %v600_v35 = vmul.f32 0.6931472, %v2114_v31 }
  0xac   : > { %v660_v7 = vpack.c.bf16 %v638_v4, %v637_v3  ;;  %v640_v25 = vmul.f32 0.4342945, %v598_v18  ;;  %v602_v36 = vmul.f32 0.6931472, %v2116_v33 }
  0xad   : > { %768 = vmatmul.bf16.gmra.mxu0 %v656_v50  ;;  %v641_v40 = vmul.f32 0.4342945, %v600_v35 }
  0xae   : > { %v661_v28 = vpack.c.bf16 %v640_v25, %v639_v24  ;;  %v642_v41 = vmul.f32 0.4342945, %v602_v36 }
  0xb0   : > { %v662_v44 = vpack.c.bf16 %v642_v41, %v641_v40  ;;  %v1856_v41 = vld [vmem:[#allocation8 + $0x18] sm:$0xff] }
  0xbd   : > { %773 = vmatmul.bf16.gmra.mxu0 %v657_v9 }
  0xcd   : > { %778 = vmatmul.bf16.gmra.mxu0 %v658_v29 }
  0xda   : > { %v744_v50 = vpop.f32.mrf.mxu0 }
  0xdb   : > { %v745_v51 = vadd.f32 %v2535_v48, %v744_v50 }
  0xdd   : > { %v824_v55 = vmax.f32 %v745_v51, 0.0  ;;  %783 = vmatmul.bf16.gmra.mxu0 %v659_v49 }
  0xdf   : > { %v860_v57 = vmul.f32 %v2541_v52, %v824_v55 }
  0xe0   : > { %v804_v58 = vpop.f32.mrf.mxu3 }
  0xe1   : > { %892 = vadd.xlane.f32.xlu0 %v860_v57  ;;  %v2563_v61 = vadd.f32 %v2535_v48, %v804_v58 }
  0xe2   : > { %v746_v62 = vpop.f32.mrf.mxu0 }
  0xe3   : > { %v747_v63 = vadd.f32 %v2535_v48, %v746_v62  ;;  %v848_v1 = vmax.f32 %v2563_v61, 0.0  ;;  %v2633_v61 = vld [vmem:[%s3084_s6] ss:$0 sm:$0xff] }
  0xe5   : > { %v825_v2 = vmax.f32 %v747_v63, 0.0 }
  0xe7   : > { %v956_v5 = vpack.c.bf16 %v825_v2, %v824_v55  ;;  %v861_v6 = vmul.f32 %v2541_v52, %v825_v2 }
  0xe8   : > { %v806_v0 = vpop.f32.mrf.mxu3 }
  0xe9   : > { %1080 = vmatmul.bf16.vlgmr.msra.gmra.mxu1 %v956_v5  ;;  %894 = vadd.xlane.f32.xlu0 %v861_v6  ;;  %v2568_v2 = vadd.f32 %v2535_v48, %v806_v0 }
  0xea   : > { %v749_v8 = vpop.f32.mrf.mxu0 }
  0xeb   : > { %v750_v9 = vadd.f32 %v2535_v48, %v749_v8  ;;  %v849_v4 = vmax.f32 %v2568_v2, 0.0 }
  0xed   : > { %v826_v12 = vmax.f32 %v750_v9, 0.0  ;;  %788 = vmatmul.bf16.gmra.mxu0 %v660_v7  ;;  %v968_v7 = vpack.c.bf16 %v849_v4, %v848_v1 }
  0xef   : > { %v862_v14 = vmul.f32 %v2541_v52, %v826_v12  ;;  %1140 = vmatmul.bf16.vlgmr.msrb.gmra.mxu3 %v968_v7 }
  0xf1   : > { %896 = vadd.xlane.f32.xlu1 %v862_v14 }
  0xf2   : > { %v751_v19 = vpop.f32.mrf.mxu0 }
  0xf3   : > { %v752_v20 = vadd.f32 %v2535_v48, %v751_v19 }
  0xf5   : > { %v827_v23 = vmax.f32 %v752_v20, 0.0  ;;  %v1860_v20 = vld [vmem:[#allocation8 + $0x38] sm:$0xff] }
  0xf6   : > { %v809_v10 = vpop.f32.mrf.mxu3  ;;  %1445 = vmatpush.bf16.msra.mxu2 %v1860_v20  ;;  %1957 = vmatpush.bf16.msra.mxu3 %v1860_v20 }
  0xf7   : > { %v863_v26 = vmul.f32 %v2541_v52, %v827_v23  ;;  %v957_v27 = vpack.c.bf16 %v827_v23, %v826_v12  ;;  %v2579_v13 = vadd.f32 %v2535_v48, %v809_v10 }
  0xf9   : > { %898 = vadd.xlane.f32.xlu1 %v863_v26  ;;  %1085 = vmatmul.bf16.gmra.mxu1 %v957_v27  ;;  %v850_v17 = vmax.f32 %v2579_v13, 0.0  ;;  %v1859_v26 = vld [vmem:[#allocation8 + $0x30] sm:$0xff] }
  0xfa   : > { %v754_v29 = vpop.f32.mrf.mxu0  ;;  %1446 = vmatpush.bf16.msra.mxu2 %v1859_v26  ;;  %1958 = vmatpush.bf16.msra.mxu3 %v1859_v26  ;;  %v2643_v26 = vld [vmem:[%s3082_s4] ss:$0 sm:$0xff] }
  0xfb   : > { %v755_v30 = vadd.f32 %v2535_v48, %v754_v29 }
  0xfd   : > { %v828_v32 = vmax.f32 %v755_v30, 0.0  ;;  %793 = vmatmul.bf16.gmra.mxu0 %v661_v28  ;;  %v1858_v30 = vld [vmem:[#allocation8 + $0x28] sm:$0xff] }
  0xfe   : > { %v811_v16 = vpop.f32.mrf.mxu3  ;;  %1447 = vmatpush.bf16.msra.mxu2 %v1858_v30  ;;  %1959 = vmatpush.bf16.msra.mxu3 %v1858_v30 }
  0xff   : > { %v864_v34 = vmul.f32 %v2541_v52, %v828_v32  ;;  %v2584_v18 = vadd.f32 %v2535_v48, %v811_v16 }
 0x101   : > { %900 = vadd.xlane.f32.xlu2 %v864_v34  ;;  %v851_v21 = vmax.f32 %v2584_v18, 0.0  ;;  %v1857_v34 = vld [vmem:[#allocation8 + $0x20] sm:$0xff] }
 0x102   : > { %v756_v37 = vpop.f32.mrf.mxu0  ;;  %1448 = vmatpush.bf16.msra.mxu2 %v1857_v34  ;;  %1960 = vmatpush.bf16.msra.mxu3 %v1857_v34 }
 0x103   : > { %v757_v38 = vadd.f32 %v2535_v48, %v756_v37  ;;  %v969_v24 = vpack.c.bf16 %v851_v21, %v850_v17 }
 0x105   : > { %v829_v39 = vmax.f32 %v757_v38, 0.0  ;;  %1145 = vmatmul.bf16.gmra.mxu3 %v969_v24 }
 0x106   : > { %1449 = vmatpush.bf16.msra.mxu2 %v1856_v41  ;;  %1961 = vmatpush.bf16.msra.mxu3 %v1856_v41 }
 0x107   : > { %v865_v42 = vmul.f32 %v2541_v52, %v829_v39  ;;  %v958_v43 = vpack.c.bf16 %v829_v39, %v828_v32 }
 0x109   : > { %902 = vadd.xlane.f32.xlu2 %v865_v42  ;;  %1090 = vmatmul.bf16.gmra.mxu1 %v958_v43 }
 0x10a   : > { %v759_v45 = vpop.f32.mrf.mxu0 }
 0x10b   : > { %v760_v46 = vadd.f32 %v2535_v48, %v759_v45 }
 0x10d   : > { %v830_v47 = vmax.f32 %v760_v46, 0.0  ;;  %798 = vmatmul.bf16.gmra.mxu0 %v662_v44 }
 0x10f   : > { %v866_v49 = vmul.f32 %v2541_v52, %v830_v47 }
 0x110   : > { %v814_v28 = vpop.f32.mrf.mxu3 }
 0x111   : > { %904 = vadd.xlane.f32.xlu0 %v866_v49  ;;  %v2595_v32 = vadd.f32 %v2535_v48, %v814_v28 }
 0x112   : > { %v761_v50 = vpop.f32.mrf.mxu0 }
 0x113   : > { %v762_v51 = vadd.f32 %v2535_v48, %v761_v50  ;;  %v852_v37 = vmax.f32 %v2595_v32, 0.0 }
 0x115   : > { %v831_v53 = vmax.f32 %v762_v51, 0.0  ;;  %v1854_v51 = vld [vmem:[#allocation8 + $0x8] sm:$0xff] }
 0x117   : > { %v867_v54 = vmul.f32 %v2541_v52, %v831_v53  ;;  %v959_v55 = vpack.c.bf16 %v831_v53, %v830_v47  ;;  %v1855_v47 = vld [vmem:[#allocation8 + $0x10] sm:$0xff] }
 0x118   : > { %v816_v36 = vpop.f32.mrf.mxu3  ;;  %1450 = vmatpush.bf16.msra.mxu2 %v1855_v47  ;;  %1962 = vmatpush.bf16.msra.mxu3 %v1855_v47 }
 0x119   : > { %906 = vadd.xlane.f32.xlu1 %v867_v54  ;;  %1095 = vmatmul.bf16.gmra.mxu1 %v959_v55  ;;  %v2600_v38 = vadd.f32 %v2535_v48, %v816_v36  ;;  %v1853_v55 = vld [vmem:[#allocation8] sm:$0xff] }
 0x11a   : > { %v764_v56 = vpop.f32.mrf.mxu0 }
 0x11b   : > { %v765_v57 = vadd.f32 %v2535_v48, %v764_v56  ;;  %v853_v40 = vmax.f32 %v2600_v38, 0.0 }
 0x11c   : > { %1451 = vmatpush.bf16.msra.mxu2 %v1854_v51  ;;  %1963 = vmatpush.bf16.msra.mxu3 %v1854_v51 }
 0x11d   : > { %v832_v59 = vmax.f32 %v765_v57, 0.0  ;;  %v970_v44 = vpack.c.bf16 %v853_v40, %v852_v37 }
 0x11f   : > { %v868_v60 = vmul.f32 %v2541_v52, %v832_v59  ;;  %1150 = vmatmul.bf16.gmra.mxu3 %v970_v44  ;;  %v887_v44 = vmul.f32 %v2541_v52, %v851_v21 }
 0x120   : > { %1452 = vmatpush.bf16.msra.mxu2 %v1853_v55  ;;  %1964 = vmatpush.bf16.msra.mxu3 %v1853_v55 }
 0x121   : > { %908 = vadd.xlane.f32.xlu2 %v868_v60 }
 0x122   : > { %v766_v62 = vpop.f32.mrf.mxu0  ;;  %v819_v57 = vpop.f32.mrf.mxu3 }
 0x123   : > { %v767_v63 = vadd.f32 %v2535_v48, %v766_v62  ;;  %v2613_v62 = vadd.f32 %v2535_v48, %v819_v57  ;;  %v888_v57 = vmul.f32 %v2541_v52, %v852_v37 }
 0x125   : > { %v833_v3 = vmax.f32 %v767_v63, 0.0 }
 0x127   : > { %v960_v5 = vpack.c.bf16 %v833_v3, %v832_v59  ;;  %v869_v6 = vmul.f32 %v2541_v52, %v833_v3 }
 0x129   : > { %1100 = vmatmul.bf16.gmra.mxu1 %v960_v5  ;;  %910 = vadd.xlane.f32.xlu0 %v869_v6  ;;  %v854_v5 = vmax.f32 %v2613_v62, 0.0 }
 0x12a   : > { %v769_v8 = vpop.f32.mrf.mxu0  ;;  %v821_v3 = vpop.f32.mrf.mxu3 }
 0x12b   : > { %v770_v9 = vadd.f32 %v2535_v48, %v769_v8  ;;  %v2618_v6 = vadd.f32 %v2535_v48, %v821_v3  ;;  %v884_v8 = vmul.f32 %v2541_v52, %v848_v1 }
 0x12d   : > { %v834_v11 = vmax.f32 %v770_v9, 0.0  ;;  %v855_v10 = vmax.f32 %v2618_v6, 0.0 }
 0x12f   : > { %v870_v12 = vmul.f32 %v2541_v52, %v834_v11 }
 0x131   : > { %912 = vadd.xlane.f32.xlu1 %v870_v12  ;;  %v971_v12 = vpack.c.bf16 %v855_v10, %v854_v5 }
 0x132   : > { %v771_v14 = vpop.f32.mrf.mxu0 }
 0x133   : > { %v772_v15 = vadd.f32 %v2535_v48, %v771_v14  ;;  %1155 = vmatmul.bf16.gmra.mxu3 %v971_v12  ;;  %v889_v12 = vmul.f32 %v2541_v52, %v853_v40  ;;  %v890_v40 = vmul.f32 %v2541_v52, %v854_v5  ;;  %v891_v5 = vmul.f32 %v2541_v52, %v855_v10 }
 0x135   : > { %v835_v19 = vmax.f32 %v772_v15, 0.0 }
 0x137   : > { %v871_v22 = vmul.f32 %v2541_v52, %v835_v19  ;;  %v961_v23 = vpack.c.bf16 %v835_v19, %v834_v11  ;;  %v885_v19 = vmul.f32 %v2541_v52, %v849_v4 }
 0x139   : > { %914 = vadd.xlane.f32.xlu2 %v871_v22  ;;  %1105 = vmatmul.bf16.gmra.mxu1 %v961_v23 }
 0x13a   : > { %v774_v25 = vpop.f32.mrf.mxu0 }
 0x13b   : > { %v775_v27 = vadd.f32 %v2535_v48, %v774_v25 }
 0x13d   : > { %v836_v29 = vmax.f32 %v775_v27, 0.0 }
 0x13f   : > { %v872_v31 = vmul.f32 %v2541_v52, %v836_v29 }
 0x141   : > { %916 = vadd.xlane.f32.xlu0 %v872_v31 }
 0x142   : > { %v776_v33 = vpop.f32.mrf.mxu0 }
 0x143   : > { %v777_v35 = vadd.f32 %v2535_v48, %v776_v33  ;;  %v886_v33 = vmul.f32 %v2541_v52, %v850_v17 }
 0x145   : > { %v837_v39 = vmax.f32 %v777_v35, 0.0 }
 0x147   : > { %v873_v42 = vmul.f32 %v2541_v52, %v837_v39  ;;  %v962_v43 = vpack.c.bf16 %v837_v39, %v836_v29 }
 0x149   : > { %918 = vadd.xlane.f32.xlu1 %v873_v42  ;;  %1110 = vmatmul.bf16.gmra.mxu1 %v962_v43 }
 0x14a   : > { %v779_v45 = vpop.f32.mrf.mxu0 }
 0x14b   : > { %v780_v46 = vadd.f32 %v2535_v48, %v779_v45 }
 0x14d   : > { %v838_v49 = vmax.f32 %v780_v46, 0.0 }
 0x14f   : > { %v874_v50 = vmul.f32 %v2541_v52, %v838_v49 }
 0x151   : > { %920 = vadd.xlane.f32.xlu2 %v874_v50 }
 0x152   : > { %v781_v53 = vpop.f32.mrf.mxu0 }
 0x153   : > { %v782_v54 = vadd.f32 %v2535_v48, %v781_v53 }
 0x154   : > { %v893_v9 = vpop.xlane.xlu0 %892 }
 0x155   : > { %v839_v56 = vmax.f32 %v782_v54, 0.0  ;;  %v992_v22 = vmul.f32 %v2633_v61, %v893_v9 }
 0x157   : > { %v963_v58 = vpack.c.bf16 %v839_v56, %v838_v49  ;;  %v875_v59 = vmul.f32 %v2541_v52, %v839_v56 }
 0x159   : > { %1115 = vmatmul.bf16.gmra.mxu1 %v963_v58  ;;  %922 = vadd.xlane.f32.xlu0 %v875_v59 }
 0x15a   : > { %v784_v60 = vpop.f32.mrf.mxu0 }
 0x15b   : > { %v785_v63 = vadd.f32 %v2535_v48, %v784_v60 }
 0x15c   : > { %v895_v23 = vpop.xlane.xlu0 %894 }
 0x15d   : > { %v840_v0 = vmax.f32 %v785_v63, 0.0  ;;  %v993_v2 = vmul.f32 %v2633_v61, %v895_v23 }
 0x15f   : > { %v876_v7 = vmul.f32 %v2541_v52, %v840_v0 }
 0x161   : > { %924 = vadd.xlane.f32.xlu1 %v876_v7  ;;  %940 = vadd.xlane.f32.xlu0 %v884_v8 }
 0x162   : > { %v786_v11 = vpop.f32.mrf.mxu0 }
 0x163   : > { %v787_v14 = vadd.f32 %v2535_v48, %v786_v11 }
 0x164   : > { %v897_v34 = vpop.xlane.xlu1 %896 }
 0x165   : > { %v841_v1 = vmax.f32 %v787_v14, 0.0  ;;  %v994_v47 = vmul.f32 %v2633_v61, %v897_v34 }
 0x166   : > { %v1081_v15 = vpop.f32.mrf.mxu1 }
 0x167   : > { %v877_v16 = vmul.f32 %v2541_v52, %v841_v1  ;;  %v964_v20 = vpack.c.bf16 %v841_v1, %v840_v0  ;;  %v1082_v25 = vadd.f32 %v1081_v15, %v992_v22 }
 0x169   : > { %926 = vadd.xlane.f32.xlu2 %v877_v16  ;;  %942 = vadd.xlane.f32.xlu1 %v885_v19  ;;  %v2648_v29 = vadd.f32 %v2643_v26, %v1082_v25 }
 0x16a   : > { %1120 = vmatmul.bf16.gmra.mxu1 %v964_v20  ;;  %v789_v24 = vpop.f32.mrf.mxu0 }
 0x16b   : > { %v790_v27 = vadd.f32 %v2535_v48, %v789_v24  ;;  %v1197_v39 = vmax.f32 %v2648_v29, 0.0 }
 0x16c   : > { %v899_v49 = vpop.xlane.xlu1 %898 }
 0x16d   : > { %v842_v28 = vmax.f32 %v790_v27, 0.0  ;;  %v995_v54 = vmul.f32 %v2633_v61, %v899_v49 }
 0x16e   : > { %v1083_v4 = vpop.f32.mrf.mxu1 }
 0x16f   : > { %v1084_v30 = vadd.f32 %v1083_v4, %v993_v2  ;;  %v878_v31 = vmul.f32 %v2541_v52, %v842_v28 }
 0x171   : > { %v2655_v35 = vadd.f32 %v2643_v26, %v1084_v30  ;;  %928 = vadd.xlane.f32.xlu2 %v878_v31  ;;  %944 = vadd.xlane.f32.xlu1 %v886_v33 }
 0x172   : > { %v791_v36 = vpop.f32.mrf.mxu0 }
 0x173   : > { %v1198_v41 = vmax.f32 %v2655_v35, 0.0  ;;  %v792_v42 = vadd.f32 %v2535_v48, %v791_v36 }
 0x174   : > { %v901_v59 = vpop.xlane.xlu2 %900 }
 0x175   : > { %v843_v43 = vmax.f32 %v792_v42, 0.0  ;;  %v1329_v13 = vpack.c.bf16 %v1198_v41, %v1197_v39  ;;  %v996_v14 = vmul.f32 %v2633_v61, %v901_v59  ;;  %v2703_v42 = vld [vmem:[%s3087_s9] ss:$0 sm:$0xff] }
 0x176   : > { %v1086_v17 = vpop.f32.mrf.mxu1  ;;  %v1233_v35 = vmul.f32 %v2703_v42, %v1197_v39 }
 0x177   : > { %1453 = vmatmul.bf16.vlgmr.msra.gmra.mxu2 %v1329_v13  ;;  %v965_v45 = vpack.c.bf16 %v843_v43, %v842_v28  ;;  %v879_v46 = vmul.f32 %v2541_v52, %v843_v43  ;;  %v1087_v51 = vadd.f32 %v1086_v17, %v994_v47 }
 0x179   : > { %946 = vadd.xlane.f32.xlu2 %v887_v44  ;;  %930 = vadd.xlane.f32.xlu0 %v879_v46  ;;  %v2672_v18 = vadd.f32 %v2643_v26, %v1087_v51 }
 0x17a   : > { %1125 = vmatmul.bf16.gmra.mxu1 %v965_v45  ;;  %v794_v50 = vpop.f32.mrf.mxu0 }
 0x17b   : > { %v795_v53 = vadd.f32 %v2535_v48, %v794_v50  ;;  %v1199_v0 = vmax.f32 %v2672_v18, 0.0 }
 0x17c   : > { %v903_v1 = vpop.xlane.xlu2 %902 }
 0x17d   : > { %v844_v55 = vmax.f32 %v795_v53, 0.0  ;;  %v997_v20 = vmul.f32 %v2633_v61, %v903_v1  ;;  %v1235_v10 = vmul.f32 %v2703_v42, %v1199_v0 }
 0x17e   : > { %v1088_v56 = vpop.f32.mrf.mxu1 }
 0x17f   : > { %v1089_v21 = vadd.f32 %v1088_v56, %v995_v54  ;;  %v880_v58 = vmul.f32 %v2541_v52, %v844_v55 }
 0x181   : > { %v2679_v60 = vadd.f32 %v2643_v26, %v1089_v21  ;;  %948 = vadd.xlane.f32.xlu2 %v888_v57  ;;  %932 = vadd.xlane.f32.xlu0 %v880_v58 }
 0x182   : > { %v796_v63 = vpop.f32.mrf.mxu0 }
 0x183   : > { %v1200_v3 = vmax.f32 %v2679_v60, 0.0  ;;  %v797_v7 = vadd.f32 %v2535_v48, %v796_v63 }
 0x184   : > { %v905_v34 = vpop.xlane.xlu0 %904 }
 0x185   : > { %v845_v8 = vmax.f32 %v797_v7, 0.0  ;;  %v1330_v32 = vpack.c.bf16 %v1200_v3, %v1199_v0  ;;  %v998_v13 = vmul.f32 %v2633_v61, %v905_v34  ;;  %v1236_v54 = vmul.f32 %v2703_v42, %v1200_v3 }
 0x186   : > { %v1091_v37 = vpop.f32.mrf.mxu1 }
 0x187   : > { %1458 = vmatmul.bf16.gmra.mxu2 %v1330_v32  ;;  %v881_v9 = vmul.f32 %v2541_v52, %v845_v8  ;;  %v966_v11 = vpack.c.bf16 %v845_v8, %v844_v55  ;;  %v1092_v16 = vadd.f32 %v1091_v37, %v996_v14 }
 0x189   : > { %934 = vadd.xlane.f32.xlu1 %v881_v9  ;;  %950 = vadd.xlane.f32.xlu0 %v889_v12  ;;  %v1169_v24 = vadd.f32 %v2643_v26, %v1092_v16 }
 0x18a   : > { %1130 = vmatmul.bf16.gmra.mxu1 %v966_v11  ;;  %v799_v15 = vpop.f32.mrf.mxu0 }
 0x18b   : > { %v800_v19 = vadd.f32 %v2535_v48, %v799_v15  ;;  %v1201_v28 = vmax.f32 %v1169_v24, 0.0  ;;  %v1141_v24 = vpop.f32.mrf.mxu3 }
 0x18c   : > { %v907_v17 = vpop.xlane.xlu1 %906 }
 0x18d   : > { %v846_v22 = vmax.f32 %v800_v19, 0.0  ;;  %v999_v45 = vmul.f32 %v2633_v61, %v907_v17 }
 0x18e   : > { %v1093_v23 = vpop.f32.mrf.mxu1 }
 0x18f   : > { %v1094_v25 = vadd.f32 %v1093_v23, %v997_v20  ;;  %v882_v38 = vmul.f32 %v2541_v52, %v846_v22 }
 0x191   : > { %v1170_v27 = vadd.f32 %v2643_v26, %v1094_v25  ;;  %936 = vadd.xlane.f32.xlu1 %v882_v38  ;;  %952 = vadd.xlane.f32.xlu0 %v890_v40 }
 0x192   : > { %v801_v2 = vpop.f32.mrf.mxu0 }
 0x193   : > { %v1202_v4 = vmax.f32 %v1170_v27, 0.0  ;;  %v802_v30 = vadd.f32 %v2535_v48, %v801_v2  ;;  %v1234_v48 = vmul.f32 %v2703_v42, %v1198_v41  ;;  %v1237_v41 = vmul.f32 %v2703_v42, %v1201_v28 }
 0x194   : > { %v909_v29 = vpop.xlane.xlu2 %908 }
 0x195   : > { %v847_v31 = vmax.f32 %v802_v30, 0.0  ;;  %v1331_v33 = vpack.c.bf16 %v1202_v4, %v1201_v28  ;;  %v1238_v39 = vmul.f32 %v2703_v42, %v1202_v4  ;;  %v1000_v55 = vmul.f32 %v2633_v61, %v909_v29 }
 0x196   : > { %v1096_v36 = vpop.f32.mrf.mxu1 }
 0x197   : > { %1463 = vmatmul.bf16.gmra.mxu2 %v1331_v33  ;;  %v883_v62 = vmul.f32 %v2541_v52, %v847_v31  ;;  %v967_v43 = vpack.c.bf16 %v847_v31, %v846_v22  ;;  %v1097_v44 = vadd.f32 %v1096_v36, %v998_v13  ;;  %v1143_v33 = vpop.f32.mrf.mxu3 }
 0x199   : > { %938 = vadd.xlane.f32.xlu2 %v883_v62  ;;  %954 = vadd.xlane.f32.xlu1 %v891_v5  ;;  %v2715_v6 = vadd.f32 %v2643_v26, %v1097_v44 }
 0x19a   : > { %1135 = vmatmul.bf16.gmra.mxu1 %v967_v43  ;;  %1267 = vadd.xlane.f32.xlu0 %v1234_v48 }
 0x19b   : > { %v1203_v49 = vmax.f32 %v2715_v6, 0.0 }
 0x19c   : > { %v911_v56 = vpop.xlane.xlu0 %910 }
 0x19d   : > { %v1001_v21 = vmul.f32 %v2633_v61, %v911_v56 }
 0x19e   : > { %v1098_v46 = vpop.f32.mrf.mxu1 }
 0x19f   : > { %v1099_v52 = vadd.f32 %v1098_v46, %v999_v45 }
 0x1a1   : > { %v2723_v47 = vadd.f32 %v2643_v26, %v1099_v52  ;;  %1269 = vadd.xlane.f32.xlu1 %v1235_v10  ;;  %1265 = vadd.xlane.f32.xlu2 %v1233_v35  ;;  %v1146_v52 = vpop.f32.mrf.mxu3 }
 0x1a2   : > { %1273 = vadd.xlane.f32.xlu0 %v1237_v41 }
 0x1a3   : > { %v1204_v50 = vmax.f32 %v2723_v47, 0.0 }
 0x1a4   : > { %v913_v7 = vpop.xlane.xlu1 %912 }
 0x1a5   : > { %v1332_v51 = vpack.c.bf16 %v1204_v50, %v1203_v49  ;;  %v1002_v32 = vmul.f32 %v2633_v61, %v913_v7 }
 0x1a6   : > { %v1101_v53 = vpop.f32.mrf.mxu1 }
 0x1a7   : > { %1468 = vmatmul.bf16.gmra.mxu2 %v1332_v51  ;;  %v1102_v18 = vadd.f32 %v1101_v53, %v1000_v55 }
 0x1a9   : > { %1275 = vadd.xlane.f32.xlu1 %v1238_v39  ;;  %1271 = vadd.xlane.f32.xlu2 %v1236_v54  ;;  %v2738_v58 = vadd.f32 %v2643_v26, %v1102_v18 }
 0x1ab   : > { %v1205_v60 = vmax.f32 %v2738_v58, 0.0 }
 0x1ac   : > { %v915_v37 = vpop.xlane.xlu2 %914 }
 0x1ad   : > { %v1003_v11 = vmul.f32 %v2633_v61, %v915_v37  ;;  %v1148_v37 = vpop.f32.mrf.mxu3 }
 0x1ae   : > { %v1103_v57 = vpop.f32.mrf.mxu1 }
 0x1af   : > { %v1104_v59 = vadd.f32 %v1103_v57, %v1001_v21 }
 0x1b1   : > { %v2741_v63 = vadd.f32 %v2643_v26, %v1104_v59 }
 0x1b3   : > { %v1206_v0 = vmax.f32 %v2741_v63, 0.0  ;;  %v2868_v63 = vld [vmem:[%s3088_s10] ss:$0 sm:$0xff] }
 0x1b4   : > { %v917_v20 = vpop.xlane.xlu0 %916 }
 0x1b5   : > { %v1333_v3 = vpack.c.bf16 %v1206_v0, %v1205_v60  ;;  %v1004_v25 = vmul.f32 %v2633_v61, %v917_v20 }
 0x1b6   : > { %v1106_v8 = vpop.f32.mrf.mxu1 }
 0x1b7   : > { %1473 = vmatmul.bf16.gmra.mxu2 %v1333_v3  ;;  %v1107_v9 = vadd.f32 %v1106_v8, %v1002_v32 }
 0x1b9   : > { %v2752_v14 = vadd.f32 %v2643_v26, %v1107_v9 }
 0x1bb   : > { %v1207_v16 = vmax.f32 %v2752_v14, 0.0 }
 0x1bc   : > { %v919_v38 = vpop.xlane.xlu1 %918 }
 0x1bd   : > { %v1005_v2 = vmul.f32 %v2633_v61, %v919_v38 }
 0x1be   : > { %v1108_v12 = vpop.f32.mrf.mxu1 }
 0x1bf   : > { %v1109_v1 = vadd.f32 %v1108_v12, %v1003_v11 }
 0x1c1   : > { %v2755_v15 = vadd.f32 %v2643_v26, %v1109_v1 }
 0x1c3   : > { %v1208_v19 = vmax.f32 %v2755_v15, 0.0 }
 0x1c4   : > { %v921_v34 = vpop.xlane.xlu2 %920 }
 0x1c5   : > { %v1334_v22 = vpack.c.bf16 %v1208_v19, %v1207_v16  ;;  %v1006_v46 = vmul.f32 %v2633_v61, %v921_v34 }
 0x1c6   : > { %v1111_v23 = vpop.f32.mrf.mxu1 }
 0x1c7   : > { %1478 = vmatmul.bf16.gmra.mxu2 %v1334_v22  ;;  %v1112_v40 = vadd.f32 %v1111_v23, %v1004_v25 }
 0x1c9   : > { %v2766_v4 = vadd.f32 %v2643_v26, %v1112_v40 }
 0x1cb   : > { %v1209_v36 = vmax.f32 %v2766_v4, 0.0 }
 0x1cc   : > { %v923_v27 = vpop.xlane.xlu0 %922 }
 0x1cd   : > { %v1007_v29 = vmul.f32 %v2633_v61, %v923_v27 }
 0x1ce   : > { %v1113_v28 = vpop.f32.mrf.mxu1 }
 0x1cf   : > { %v1114_v30 = vadd.f32 %v1113_v28, %v1005_v2 }
 0x1d1   : > { %v2769_v31 = vadd.f32 %v2643_v26, %v1114_v30 }
 0x1d3   : > { %v1210_v62 = vmax.f32 %v2769_v31, 0.0 }
 0x1d4   : > { %v925_v5 = vpop.xlane.xlu1 %924  ;;  %v941_v43 = vpop.xlane.xlu0 %940 }
 0x1d5   : > { %v1016_v48 = vmul.f32 %v2633_v61, %v941_v43  ;;  %v1335_v13 = vpack.c.bf16 %v1210_v62, %v1209_v36 }
 0x1d6   : > { %v1116_v17 = vpop.f32.mrf.mxu1 }
 0x1d7   : > { %v1142_v44 = vadd.f32 %v1141_v24, %v1016_v48  ;;  %1483 = vmatmul.bf16.gmra.mxu2 %v1335_v13  ;;  %v1117_v35 = vadd.f32 %v1116_v17, %v1006_v46  ;;  %v1008_v24 = vmul.f32 %v2633_v61, %v925_v5 }
 0x1d9   : > { %v1189_v45 = vadd.f32 %v2643_v26, %v1142_v44  ;;  %v2784_v18 = vadd.f32 %v2643_v26, %v1117_v35 }
 0x1db   : > { %v1221_v10 = vmax.f32 %v1189_v45, 0.0  ;;  %v1211_v7 = vmax.f32 %v2784_v18, 0.0 }
 0x1dc   : > { %v927_v41 = vpop.xlane.xlu2 %926  ;;  %v943_v51 = vpop.xlane.xlu1 %942 }
 0x1dd   : > { %v1017_v53 = vmul.f32 %v2633_v61, %v943_v51  ;;  %v1257_v39 = vmul.f32 %v2703_v42, %v1221_v10  ;;  %v1009_v30 = vmul.f32 %v2633_v61, %v927_v41  ;;  %v1241_v41 = vmul.f32 %v2703_v42, %v1205_v60 }
 0x1de   : > { %v1118_v54 = vpop.f32.mrf.mxu1 }
 0x1df   : > { %v1144_v55 = vadd.f32 %v1143_v33, %v1017_v53  ;;  %v1119_v56 = vadd.f32 %v1118_v54, %v1007_v29  ;;  %1313 = vadd.xlane.f32.xlu2 %v1257_v39  ;;  %v1151_v33 = vpop.f32.mrf.mxu3 }
 0x1e1   : > { %v2787_v21 = vadd.f32 %v2643_v26, %v1119_v56  ;;  %v1190_v57 = vadd.f32 %v2643_v26, %v1144_v55 }
 0x1e3   : > { %v1212_v59 = vmax.f32 %v2787_v21, 0.0  ;;  %v1222_v3 = vmax.f32 %v1190_v57, 0.0 }
 0x1e4   : > { %v929_v8 = vpop.xlane.xlu2 %928  ;;  %v945_v32 = vpop.xlane.xlu1 %944 }
 0x1e5   : > { %v1018_v9 = vmul.f32 %v2633_v61, %v945_v32  ;;  %v1258_v11 = vmul.f32 %v2703_v42, %v1222_v3  ;;  %v1341_v12 = vpack.c.bf16 %v1222_v3, %v1221_v10  ;;  %v1336_v1 = vpack.c.bf16 %v1212_v59, %v1211_v7 }
 0x1e6   : > { %v1010_v58 = vmul.f32 %v2633_v61, %v929_v8  ;;  %v1239_v8 = vmul.f32 %v2703_v42, %v1203_v49 }
 0x1e7   : > { %v1147_v20 = vadd.f32 %v1146_v52, %v1018_v9  ;;  %v1121_v22 = vpop.f32.mrf.mxu1  ;;  %1315 = vadd.xlane.f32.xlu0 %v1258_v11  ;;  %1513 = vmatmul.bf16.vlgmr.msra.gmra.mxu3 %v1341_v12  ;;  %v1153_v55 = vpop.f32.mrf.mxu3  ;;  %v1244_v11 = vmul.f32 %v2703_v42, %v1208_v19 }
 0x1e8   : > { %1488 = vmatmul.bf16.gmra.mxu2 %v1336_v1  ;;  %v1122_v38 = vadd.f32 %v1121_v22, %v1008_v24 }
 0x1e9   : > { %v1191_v23 = vadd.f32 %v2643_v26, %v1147_v20 }
 0x1ea   : > { %v2804_v48 = vadd.f32 %v2643_v26, %v1122_v38 }
 0x1eb   : > { %v1223_v25 = vmax.f32 %v1191_v23, 0.0 }
 0x1ec   : > { %v947_v40 = vpop.xlane.xlu2 %946  ;;  %v931_v27 = vpop.xlane.xlu0 %930  ;;  %v1213_v45 = vmax.f32 %v2804_v48, 0.0 }
 0x1ed   : > { %v1019_v2 = vmul.f32 %v2633_v61, %v947_v40  ;;  %v1259_v28 = vmul.f32 %v2703_v42, %v1223_v25  ;;  %v1011_v1 = vmul.f32 %v2633_v61, %v931_v27 }
 0x1ef   : > { %v1149_v34 = vadd.f32 %v1148_v37, %v1019_v2  ;;  %v1123_v43 = vpop.f32.mrf.mxu1  ;;  %1317 = vadd.xlane.f32.xlu1 %v1259_v28  ;;  %v1156_v15 = vpop.f32.mrf.mxu3  ;;  %v1247_v28 = vmul.f32 %v2703_v42, %v1211_v7 }
 0x1f0   : > { %v1124_v13 = vadd.f32 %v1123_v43, %v1009_v30  ;;  %v1240_v30 = vmul.f32 %v2703_v42, %v1204_v50 }
 0x1f1   : > { %v1192_v5 = vadd.f32 %v2643_v26, %v1149_v34  ;;  %v1242_v34 = vmul.f32 %v2703_v42, %v1206_v0 }
 0x1f2   : > { %v2808_v17 = vadd.f32 %v2643_v26, %v1124_v13 }
 0x1f3   : > { %v1224_v44 = vmax.f32 %v1192_v5, 0.0 }
 0x1f4   : > { %v1214_v46 = vmax.f32 %v2808_v17, 0.0  ;;  %v949_v52 = vpop.xlane.xlu2 %948  ;;  %v933_v10 = vpop.xlane.xlu0 %932  ;;  %v1245_v17 = vmul.f32 %v2703_v42, %v1209_v36 }
 0x1f5   : > { %v1020_v35 = vmul.f32 %v2633_v61, %v949_v52  ;;  %v1342_v51 = vpack.c.bf16 %v1224_v44, %v1223_v25  ;;  %v1260_v29 = vmul.f32 %v2703_v42, %v1224_v44  ;;  %v1012_v18 = vmul.f32 %v2633_v61, %v933_v10 }
 0x1f6   : > { %v1337_v53 = vpack.c.bf16 %v1214_v46, %v1213_v45 }
 0x1f7   : > { %v1152_v39 = vadd.f32 %v1151_v33, %v1020_v35  ;;  %v1126_v54 = vpop.f32.mrf.mxu1  ;;  %1281 = vadd.xlane.f32.xlu1 %v1241_v41  ;;  %1518 = vmatmul.bf16.gmra.mxu3 %v1342_v51  ;;  %v1158_v5 = vpop.f32.mrf.mxu3  ;;  %v1250_v51 = vmul.f32 %v2703_v42, %v1214_v46 }
 0x1f8   : > { %1493 = vmatmul.bf16.gmra.mxu2 %v1337_v53  ;;  %1319 = vadd.xlane.f32.xlu2 %v1260_v29  ;;  %v1127_v3 = vadd.f32 %v1126_v54, %v1010_v58  ;;  %v1243_v29 = vmul.f32 %v2703_v42, %v1207_v16 }
 0x1f9   : > { %v1193_v56 = vadd.f32 %v2643_v26, %v1152_v39  ;;  %v2883_v39 = vld [vmem:[%s3086_s8] ss:$0 sm:$0xff] }
 0x1fa   : > { %v2823_v60 = vpop.f32.mrf.mxu2  ;;  %v2835_v23 = vadd.f32 %v2643_v26, %v1127_v3 }
 0x1fb   : > { %v1225_v57 = vmax.f32 %v1193_v56, 0.0 }
 0x1fc   : > { %v935_v32 = vpop.xlane.xlu1 %934  ;;  %v951_v37 = vpop.xlane.xlu0 %950  ;;  %v1215_v49 = vmax.f32 %v2835_v23, 0.0 }
 0x1fd   : > { %v1021_v9 = vmul.f32 %v2633_v61, %v951_v37  ;;  %v1261_v12 = vmul.f32 %v2703_v42, %v1225_v57  ;;  %v1013_v53 = vmul.f32 %v2633_v61, %v935_v32 }
 0x1ff   : > { %v1154_v20 = vadd.f32 %v1153_v55, %v1021_v9  ;;  %v1128_v22 = vpop.f32.mrf.mxu1  ;;  %1287 = vadd.xlane.f32.xlu1 %v1244_v11  ;;  %1321 = vadd.xlane.f32.xlu0 %v1261_v12 }
 0x200   : > { %v1129_v24 = vadd.f32 %v1128_v22, %v1011_v1  ;;  %1277 = vadd.xlane.f32.xlu2 %v1239_v8  ;;  %v1246_v1 = vmul.f32 %v2703_v42, %v1210_v62 }
 0x201   : > { %v2838_v19 = vadd.f32 %v2643_v26, %v1154_v20 }
 0x202   : > { %v2841_v25 = vadd.f32 %v2643_v26, %v1129_v24  ;;  %v1456_v38 = vpop.f32.mrf.mxu2 }
 0x203   : > { %v1226_v6 = vmax.f32 %v2838_v19, 0.0 }
 0x204   : > { %v1216_v40 = vmax.f32 %v2841_v25, 0.0  ;;  %v2846_v27 = vpop.xlane.xlu1 %936  ;;  %v953_v2 = vpop.xlane.xlu0 %952 }
 0x205   : > { %v1343_v33 = vpack.c.bf16 %v1226_v6, %v1225_v57  ;;  %v1022_v7 = vmul.f32 %v2633_v61, %v953_v2  ;;  %v1262_v25 = vmul.f32 %v2703_v42, %v1226_v6 }
 0x206   : > { %v1338_v43 = vpack.c.bf16 %v1216_v40, %v1215_v49 }
 0x207   : > { %v1131_v13 = vpop.f32.mrf.mxu1  ;;  %1293 = vadd.xlane.f32.xlu1 %v1247_v28  ;;  %1279 = vadd.xlane.f32.xlu0 %v1240_v30  ;;  %v1157_v0 = vadd.f32 %v1156_v15, %v1022_v7 }
 0x208   : > { %1283 = vadd.xlane.f32.xlu2 %v1242_v34  ;;  %1498 = vmatmul.bf16.gmra.mxu2 %v1338_v43  ;;  %v1132_v47 = vadd.f32 %v1131_v13, %v1012_v18 }
 0x209   : > { %1523 = vmatmul.bf16.gmra.mxu3 %v1343_v33  ;;  %v2890_v46 = vadd.f32 %v2643_v26, %v1157_v0 }
 0x20a   : > { %v1459_v50 = vpop.f32.mrf.mxu2  ;;  %v1185_v10 = vadd.f32 %v2643_v26, %v1132_v47  ;;  %v1249_v47 = vmul.f32 %v2703_v42, %v1213_v45 }
 0x20b   : > { %v1227_v36 = vmax.f32 %v2890_v46, 0.0 }
 0x20c   : > { %v939_v44 = vpop.xlane.xlu2 %938  ;;  %v955_v52 = vpop.xlane.xlu1 %954  ;;  %v1217_v58 = vmax.f32 %v1185_v10, 0.0 }
 0x20d   : > { %v1023_v35 = vmul.f32 %v2633_v61, %v955_v52  ;;  %v1268_v41 = vpop.xlane.xlu0 %1267 }
 0x20e   : > { %v1366_v54 = vmul.f32 %v2868_v63, %v1268_v41  ;;  %v1253_v22 = vmul.f32 %v2703_v42, %v1217_v58 }
 0x20f   : > { %v1133_v14 = vpop.f32.mrf.mxu1  ;;  %v1159_v55 = vadd.f32 %v1158_v5, %v1023_v35  ;;  %1299 = vadd.xlane.f32.xlu1 %v1250_v51  ;;  %1285 = vadd.xlane.f32.xlu0 %v1243_v29  ;;  %v1252_v29 = vmul.f32 %v2703_v42, %v1216_v40 }
 0x210   : > { %v1457_v16 = vadd.f32 %v1456_v38, %v1366_v54  ;;  %v1134_v56 = vadd.f32 %v1133_v14, %v1013_v53  ;;  %1289 = vadd.xlane.f32.xlu2 %v1245_v17  ;;  %v1248_v38 = vmul.f32 %v2703_v42, %v1212_v59  ;;  %v1014_v59 = vmul.f32 %v2633_v61, %v2846_v27 }
 0x211   : > { %v2893_v57 = vadd.f32 %v2643_v26, %v1159_v55  ;;  %v1251_v27 = vmul.f32 %v2703_v42, %v1215_v49  ;;  %v1263_v55 = vmul.f32 %v2703_v42, %v1227_v36 }
 0x212   : > { %v1539_v3 = vadd.f32 %v2883_v39, %v1457_v16  ;;  %v1186_v4 = vadd.f32 %v2643_v26, %v1134_v56  ;;  %v1461_v32 = vpop.f32.mrf.mxu2 }
 0x213   : > { %v1228_v37 = vmax.f32 %v2893_v57, 0.0 }
 0x214   : > { %1571 = vst [vmem:[%s2899_s28 + $0x8] sm:$0xff] %v1539_v3  ;;  %v1218_v9 = vmax.f32 %v1186_v4, 0.0  ;;  %v1270_v11 = vpop.xlane.xlu1 %1269  ;;  %v1266_v12 = vpop.xlane.xlu2 %1265 }
 0x215   : > { %v1367_v8 = vmul.f32 %v2868_v63, %v1270_v11  ;;  %v1365_v20 = vmul.f32 %v2868_v63, %v1266_v12  ;;  %v1344_v24 = vpack.c.bf16 %v1228_v37, %v1227_v36  ;;  %v1274_v15 = vpop.xlane.xlu0 %1273  ;;  %v1264_v16 = vmul.f32 %v2703_v42, %v1228_v37 }
 0x216   : > { %v1339_v31 = vpack.c.bf16 %v1218_v9, %v1217_v58  ;;  %v1369_v21 = vmul.f32 %v2868_v63, %v1274_v15  ;;  %v1254_v53 = vmul.f32 %v2703_v42, %v1218_v9 }
 0x217   : > { %v1460_v62 = vadd.f32 %v1459_v50, %v1367_v8  ;;  %v1455_v2 = vadd.f32 %v2823_v60, %v1365_v20  ;;  %v1136_v28 = vpop.f32.mrf.mxu1  ;;  %1291 = vadd.xlane.f32.xlu0 %v1246_v1  ;;  %1305 = vadd.xlane.f32.xlu1 %v1253_v22  ;;  %v1015_v50 = vmul.f32 %v2633_v61, %v939_v44 }
 0x218   : > { %1295 = vadd.xlane.f32.xlu2 %v1248_v38  ;;  %1503 = vmatmul.bf16.gmra.mxu2 %v1339_v31  ;;  %v1137_v60 = vadd.f32 %v1136_v28, %v1014_v59 }
 0x219   : > { %v1540_v30 = vadd.f32 %v2883_v39, %v1460_v62  ;;  %v1538_v33 = vadd.f32 %v2883_v39, %v1455_v2  ;;  %1528 = vmatmul.bf16.gmra.mxu3 %v1344_v24 }
 0x21a   : > { %v1464_v34 = vpop.f32.mrf.mxu2  ;;  %v1187_v10 = vadd.f32 %v2643_v26, %v1137_v60 }
 0x21b   : > { %1572 = vst [vmem:[%s2899_s28 + $0x10] sm:$0xff] %v1540_v30  ;;  %v1465_v43 = vadd.f32 %v1464_v34, %v1369_v21 }
 0x21c   : > { %1570 = vst [vmem:[%s2899_s28] sm:$0xff] %v1538_v33  ;;  %v1272_v18 = vpop.xlane.xlu2 %1271  ;;  %v1276_v0 = vpop.xlane.xlu1 %1275  ;;  %v1219_v41 = vmax.f32 %v1187_v10, 0.0 }
 0x21d   : > { %v1542_v7 = vadd.f32 %v2883_v39, %v1465_v43  ;;  %v1368_v13 = vmul.f32 %v2868_v63, %v1272_v18  ;;  %v1370_v48 = vmul.f32 %v2868_v63, %v1276_v0 }
 0x21e   : > { %v1255_v14 = vmul.f32 %v2703_v42, %v1219_v41 }
 0x21f   : > { %1574 = vst [vmem:[%s2899_s28 + $0x20] sm:$0xff] %v1542_v7  ;;  %v1462_v5 = vadd.f32 %v1461_v32, %v1368_v13  ;;  %v1138_v52 = vpop.f32.mrf.mxu1  ;;  %1297 = vadd.xlane.f32.xlu0 %v1249_v47 }
 0x220   : > { %v1139_v35 = vadd.f32 %v1138_v52, %v1015_v50  ;;  %1301 = vadd.xlane.f32.xlu2 %v1251_v27 }
 0x221   : > { %v1541_v45 = vadd.f32 %v2883_v39, %v1462_v5 }
 0x222   : > { %v1188_v61 = vadd.f32 %v2643_v26, %v1139_v35  ;;  %v1466_v44 = vpop.f32.mrf.mxu2 }
 0x223   : > { %1573 = vst [vmem:[%s2899_s28 + $0x18] sm:$0xff] %v1541_v45  ;;  %v1467_v23 = vadd.f32 %v1466_v44, %v1370_v48 }
 0x224   : > { %v1220_v49 = vmax.f32 %v1188_v61, 0.0 }
 0x225   : > { %v1543_v51 = vadd.f32 %v2883_v39, %v1467_v23 }
 0x226   : > { %v1340_v54 = vpack.c.bf16 %v1220_v49, %v1219_v41  ;;  %v1256_v17 = vmul.f32 %v2703_v42, %v1220_v49 }
 0x227   : > { %1575 = vst [vmem:[%s2899_s28 + $0x28] sm:$0xff] %v1543_v51  ;;  %1303 = vadd.xlane.f32.xlu0 %v1252_v29 }
 0x228   : > { %1307 = vadd.xlane.f32.xlu2 %v1254_v53  ;;  %1508 = vmatmul.bf16.gmra.mxu2 %v1340_v54 }
 0x229   : > { %1311 = vadd.xlane.f32.xlu1 %v1256_v17 }
 0x22a   : > { %v1469_v26 = vpop.f32.mrf.mxu2 }
 0x22f   : > { %1309 = vadd.xlane.f32.xlu0 %v1255_v14 }
 0x230   : > { %1325 = vadd.xlane.f32.xlu2 %v1263_v55 }
 0x231   : > { %1323 = vadd.xlane.f32.xlu1 %v1262_v25 }
 0x232   : > { %v1471_v40 = vpop.f32.mrf.mxu2 }
 0x237   : > { %1327 = vadd.xlane.f32.xlu0 %v1264_v16 }
 0x23a   : > { %v1474_v56 = vpop.f32.mrf.mxu2 }
 0x242   : > { %v1476_v58 = vpop.f32.mrf.mxu2 }
 0x24a   : > { %v2955_v3 = vpop.f32.mrf.mxu2 }
 0x252   : > { %v1481_v46 = vpop.f32.mrf.mxu2  ;;  %v1314_v6 = vpop.xlane.xlu2 %1313 }
 0x253   : > { %v1389_v36 = vmul.f32 %v2868_v63, %v1314_v6 }
 0x25a   : > { %v2957_v4 = vpop.f32.mrf.mxu2  ;;  %v1316_v1 = vpop.xlane.xlu0 %1315 }
 0x25b   : > { %v1390_v24 = vmul.f32 %v2868_v63, %v1316_v1 }
 0x262   : > { %v1318_v32 = vpop.xlane.xlu1 %1317  ;;  %v2959_v19 = vpop.f32.mrf.mxu2 }
 0x263   : > { %v1391_v18 = vmul.f32 %v2868_v63, %v1318_v32 }
 0x26a   : > { %v1282_v9 = vpop.xlane.xlu1 %1281  ;;  %v1514_v57 = vpop.f32.mrf.mxu3 }
 0x26b   : > { %v1373_v42 = vmul.f32 %v2868_v63, %v1282_v9  ;;  %v1489_v37 = vpop.f32.mrf.mxu2  ;;  %v1515_v11 = vadd.f32 %v1514_v57, %v1389_v36  ;;  %v1320_v12 = vpop.xlane.xlu2 %1319 }
 0x26c   : > { %v1392_v41 = vmul.f32 %v2868_v63, %v1320_v12 }
 0x26d   : > { %v1475_v8 = vadd.f32 %v1474_v56, %v1373_v42  ;;  %v1562_v20 = vadd.f32 %v2883_v39, %v1515_v11 }
 0x26f   : > { %v1546_v22 = vadd.f32 %v2883_v39, %v1475_v8  ;;  %1594 = vst [vmem:[%s2899_s28 + $0xc0] sm:$0xff] %v1562_v20 }
 0x271   : > { %1578 = vst [vmem:[%s2899_s28 + $0x40] sm:$0xff] %v1546_v22 }
 0x272   : > { %v1288_v15 = vpop.xlane.xlu1 %1287  ;;  %v1516_v38 = vpop.f32.mrf.mxu3 }
 0x273   : > { %v1376_v31 = vmul.f32 %v2868_v63, %v1288_v15  ;;  %v2969_v62 = vpop.f32.mrf.mxu2  ;;  %v1517_v2 = vadd.f32 %v1516_v38, %v1390_v24  ;;  %v1278_v28 = vpop.xlane.xlu2 %1277 }
 0x274   : > { %v1371_v30 = vmul.f32 %v2868_v63, %v1278_v28  ;;  %v1322_v33 = vpop.xlane.xlu0 %1321 }
 0x275   : > { %v1482_v21 = vadd.f32 %v1481_v46, %v1376_v31  ;;  %v1563_v59 = vadd.f32 %v2883_v39, %v1517_v2  ;;  %v1393_v36 = vmul.f32 %v2868_v63, %v1322_v33 }
 0x276   : > { %v1470_v34 = vadd.f32 %v1469_v26, %v1371_v30 }
 0x277   : > { %v1549_v43 = vadd.f32 %v2883_v39, %v1482_v21  ;;  %1595 = vst [vmem:[%s2899_s28 + $0xc8] sm:$0xff] %v1563_v59 }
 0x278   : > { %v1544_v60 = vadd.f32 %v2883_v39, %v1470_v34 }
 0x279   : > { %1581 = vst [vmem:[%s2899_s28 + $0x58] sm:$0xff] %v1549_v43 }
 0x27a   : > { %1576 = vst [vmem:[%s2899_s28 + $0x30] sm:$0xff] %v1544_v60  ;;  %v1294_v7 = vpop.xlane.xlu1 %1293  ;;  %v1519_v13 = vpop.f32.mrf.mxu3 }
 0x27b   : > { %v1379_v47 = vmul.f32 %v2868_v63, %v1294_v7  ;;  %v1494_v50 = vpop.f32.mrf.mxu2  ;;  %v1520_v0 = vadd.f32 %v1519_v13, %v1391_v18  ;;  %v1284_v27 = vpop.xlane.xlu2 %1283 }
 0x27c   : > { %v1374_v5 = vmul.f32 %v2868_v63, %v1284_v27  ;;  %v1280_v52 = vpop.xlane.xlu0 %1279 }
 0x27d   : > { %v1490_v10 = vadd.f32 %v1489_v37, %v1379_v47  ;;  %v1564_v35 = vadd.f32 %v2883_v39, %v1520_v0  ;;  %v1372_v48 = vmul.f32 %v2868_v63, %v1280_v52 }
 0x27e   : > { %v1477_v45 = vadd.f32 %v1476_v58, %v1374_v5 }
 0x27f   : > { %v1552_v61 = vadd.f32 %v2883_v39, %v1490_v10  ;;  %1596 = vst [vmem:[%s2899_s28 + $0xd0] sm:$0xff] %v1564_v35  ;;  %v1472_v44 = vadd.f32 %v1471_v40, %v1372_v48 }
 0x280   : > { %v1547_v23 = vadd.f32 %v2883_v39, %v1477_v45 }
 0x281   : > { %1584 = vst [vmem:[%s2899_s28 + $0x70] sm:$0xff] %v1552_v61  ;;  %v1545_v49 = vadd.f32 %v2883_v39, %v1472_v44 }
 0x282   : > { %1579 = vst [vmem:[%s2899_s28 + $0x48] sm:$0xff] %v1547_v23  ;;  %v1300_v51 = vpop.xlane.xlu1 %1299  ;;  %v1521_v29 = vpop.f32.mrf.mxu3 }
 0x283   : > { %1577 = vst [vmem:[%s2899_s28 + $0x38] sm:$0xff] %v1545_v49  ;;  %v1382_v53 = vmul.f32 %v2868_v63, %v1300_v51  ;;  %v1496_v54 = vpop.f32.mrf.mxu2  ;;  %v1522_v17 = vadd.f32 %v1521_v29, %v1392_v41  ;;  %v1290_v26 = vpop.xlane.xlu2 %1289 }
 0x284   : > { %v1377_v14 = vmul.f32 %v2868_v63, %v1290_v26  ;;  %v1286_v55 = vpop.xlane.xlu0 %1285 }
 0x285   : > { %v1497_v25 = vadd.f32 %v1496_v54, %v1382_v53  ;;  %v1565_v40 = vadd.f32 %v2883_v39, %v1522_v17  ;;  %v1375_v16 = vmul.f32 %v2868_v63, %v1286_v55 }
 0x286   : > { %v1485_v56 = vadd.f32 %v2957_v4, %v1377_v14 }
 0x287   : > { %v1555_v58 = vadd.f32 %v2883_v39, %v1497_v25  ;;  %1597 = vst [vmem:[%s2899_s28 + $0xd8] sm:$0xff] %v1565_v40  ;;  %v1480_v46 = vadd.f32 %v2955_v3, %v1375_v16 }
 0x288   : > { %v1550_v32 = vadd.f32 %v2883_v39, %v1485_v56 }
 0x289   : > { %1587 = vst [vmem:[%s2899_s28 + $0x88] sm:$0xff] %v1555_v58  ;;  %v1548_v6 = vadd.f32 %v2883_v39, %v1480_v46 }
 0x28a   : > { %1582 = vst [vmem:[%s2899_s28 + $0x60] sm:$0xff] %v1550_v32  ;;  %v1306_v38 = vpop.xlane.xlu1 %1305 }
 0x28b   : > { %1580 = vst [vmem:[%s2899_s28 + $0x50] sm:$0xff] %v1548_v6  ;;  %v1296_v9 = vpop.xlane.xlu2 %1295  ;;  %v1499_v57 = vpop.f32.mrf.mxu2  ;;  %v1385_v21 = vmul.f32 %v2868_v63, %v1306_v38 }
 0x28c   : > { %v1380_v4 = vmul.f32 %v2868_v63, %v1296_v9  ;;  %v1524_v42 = vpop.f32.mrf.mxu3  ;;  %v1292_v37 = vpop.xlane.xlu0 %1291 }
 0x28d   : > { %v1525_v11 = vadd.f32 %v1524_v42, %v1393_v36  ;;  %v1378_v3 = vmul.f32 %v2868_v63, %v1292_v37 }
 0x28e   : > { %v1492_v12 = vadd.f32 %v2969_v62, %v1380_v4 }
 0x28f   : > { %v1566_v1 = vadd.f32 %v2883_v39, %v1525_v11  ;;  %v1487_v8 = vadd.f32 %v2959_v19, %v1378_v3 }
 0x290   : > { %v1553_v20 = vadd.f32 %v2883_v39, %v1492_v12 }
 0x291   : > { %1598 = vst [vmem:[%s2899_s28 + $0xe0] sm:$0xff] %v1566_v1  ;;  %v1551_v22 = vadd.f32 %v2883_v39, %v1487_v8 }
 0x292   : > { %1585 = vst [vmem:[%s2899_s28 + $0x78] sm:$0xff] %v1553_v20 }
 0x293   : > { %1583 = vst [vmem:[%s2899_s28 + $0x68] sm:$0xff] %v1551_v22  ;;  %v1302_v24 = vpop.xlane.xlu2 %1301  ;;  %v1501_v15 = vpop.f32.mrf.mxu2 }
 0x294   : > { %v1383_v31 = vmul.f32 %v2868_v63, %v1302_v24  ;;  %v1298_v2 = vpop.xlane.xlu0 %1297  ;;  %v1526_v59 = vpop.f32.mrf.mxu3 }
 0x295   : > { %v1381_v62 = vmul.f32 %v2868_v63, %v1298_v2 }
 0x296   : > { %v1500_v28 = vadd.f32 %v1499_v57, %v1383_v31 }
 0x297   : > { %v1495_v19 = vadd.f32 %v1494_v50, %v1381_v62 }
 0x298   : > { %v1556_v30 = vadd.f32 %v2883_v39, %v1500_v28 }
 0x299   : > { %v1554_v33 = vadd.f32 %v2883_v39, %v1495_v19 }
 0x29a   : > { %1588 = vst [vmem:[%s2899_s28 + $0x90] sm:$0xff] %v1556_v30 }
 0x29b   : > { %1586 = vst [vmem:[%s2899_s28 + $0x80] sm:$0xff] %v1554_v33  ;;  %v1308_v34 = vpop.xlane.xlu2 %1307  ;;  %v1504_v43 = vpop.f32.mrf.mxu2 }
 0x29c   : > { %v1505_v60 = vadd.f32 %v1504_v43, %v1385_v21  ;;  %v1312_v18 = vpop.xlane.xlu1 %1311  ;;  %v1304_v7 = vpop.xlane.xlu0 %1303  ;;  %v1386_v0 = vmul.f32 %v2868_v63, %v1308_v34 }
 0x29d   : > { %v1384_v47 = vmul.f32 %v2868_v63, %v1304_v7  ;;  %v1529_v45 = vpop.f32.mrf.mxu3  ;;  %v1388_v16 = vmul.f32 %v2868_v63, %v1312_v18 }
 0x29e   : > { %v1558_v13 = vadd.f32 %v2883_v39, %v1505_v60 }
 0x29f   : > { %v1502_v50 = vadd.f32 %v1501_v15, %v1384_v47 }
 0x2a0   : > { %1590 = vst [vmem:[%s2899_s28 + $0xa0] sm:$0xff] %v1558_v13 }
 0x2a1   : > { %v1557_v27 = vadd.f32 %v2883_v39, %v1502_v50 }
 0x2a3   : > { %v1506_v5 = vpop.f32.mrf.mxu2  ;;  %v1326_v52 = vpop.xlane.xlu2 %1325  ;;  %1589 = vst [vmem:[%s2899_s28 + $0x98] sm:$0xff] %v1557_v27 }
 0x2a4   : > { %v1507_v10 = vadd.f32 %v1506_v5, %v1386_v0  ;;  %v1324_v35 = vpop.xlane.xlu1 %1323  ;;  %v1395_v48 = vmul.f32 %v2868_v63, %v1326_v52  ;;  %v1310_v44 = vpop.xlane.xlu0 %1309 }
 0x2a5   : > { %v1394_v61 = vmul.f32 %v2868_v63, %v1324_v35  ;;  %v1387_v53 = vmul.f32 %v2868_v63, %v1310_v44  ;;  %v1531_v25 = vpop.f32.mrf.mxu3 }
 0x2a6   : > { %v1559_v23 = vadd.f32 %v2883_v39, %v1507_v10  ;;  %v1530_v41 = vadd.f32 %v1529_v45, %v1395_v48 }
 0x2a7   : > { %v1527_v49 = vadd.f32 %v1526_v59, %v1394_v61 }
 0x2a8   : > { %1591 = vst [vmem:[%s2899_s28 + $0xa8] sm:$0xff] %v1559_v23  ;;  %v1568_v51 = vadd.f32 %v2883_v39, %v1530_v41 }
 0x2a9   : > { %v1567_v29 = vadd.f32 %v2883_v39, %v1527_v49 }
 0x2aa   : > { %1600 = vst [vmem:[%s2899_s28 + $0xf0] sm:$0xff] %v1568_v51 }
 0x2ab   : > { %1599 = vst [vmem:[%s2899_s28 + $0xe8] sm:$0xff] %v1567_v29  ;;  %v1509_v54 = vpop.f32.mrf.mxu2 }
 0x2ac   : > { %v1510_v17 = vadd.f32 %v1509_v54, %v1387_v53  ;;  %v1328_v26 = vpop.xlane.xlu0 %1327 }
 0x2ad   : > { %v1396_v55 = vmul.f32 %v2868_v63, %v1328_v26 }
 0x2ae   : > { %v1560_v14 = vadd.f32 %v2883_v39, %v1510_v17 }
 0x2af   : > { %v1532_v40 = vadd.f32 %v1531_v25, %v1396_v55 }
 0x2b0   : > { %1592 = vst [vmem:[%s2899_s28 + $0xb0] sm:$0xff] %v1560_v14 }
 0x2b1   : > { %v1569_v56 = vadd.f32 %v2883_v39, %v1532_v40 }
 0x2b3   : > { %v1511_v58 = vpop.f32.mrf.mxu2  ;;  %1601 = vst [vmem:[%s2899_s28 + $0xf8] sm:$0xff] %v1569_v56 }
 0x2b4   : > { %v1512_v46 = vadd.f32 %v1511_v58, %v1388_v16 }
 0x2b6   : > { %v1561_v32 = vadd.f32 %v2883_v39, %v1512_v46 }
 0x2b8   : > { %1593 = vst [vmem:[%s2899_s28 + $0xb8] sm:$0xff] %v1561_v32 }
 0x2b9   : > { %2264 = shalt.err (!%p2261_p10)
}
 0x2ba   : > { %s2318_s3 = smov 128   ;;  %s2319_s28 = smov 8  }
 0x2bb   : > { %1979 = dma.vmem_to_hbm [thread:$0]  (%p2470_p0), %s1616_s21, 4096, %s1618_s12, %s1603_s27, %s2318_s3, %s2318_s3, %s2319_s28  }
 0x2bc PF: > { %p2006_p11 = scmp.ge.s32.totalorder %s2311_s20, 2  ;;  %s1632_s16 = sand.u32 1, %s2299_s17  }
 0x2bd   : > { %s1633_s22 = scalar_lea.sflag [#allocation4], %s1632_s16 }
 0x2be   : > { %p1996_p12 = pnand %p2006_p11, %p2415_p6 }
 0x2c0   : > { %p1997_p13 = pneg %p1996_p12 }
 0x2c2   : > { %2294 = dma.done.wait (%p1997_p13), %s1633_s22, 4096  }
 0x2c3   : > { %2296 = vsyncadd (%p1997_p13), %s1633_s22, 4294963200  ;;  %s3109_s30 = sld [smem:[#allocation15_spill]]  ;;  %p26_p3 = scmp.ge.s32.totalorder %s2452_s1, 6  }
 0x2c4   : > { %s3110_s19 = sld [smem:[#allocation16_spill]]  ;;  %s3111_s17 = smov %s2303_s18 }
 0x2c5   : > { %s3113_s20 = smov %s2452_s1  ;;  %28 = sbr.rel (!%p26_p3) target bundleno = 11 (0xb), region = 121 }
 0x2c9   : > { %s3112_s18 = smov %s3109_s30 }
 0x2ca   :  { %1639 = vsyncpa [#allocation3], 1 }
 0x2cb   :  { %1641 = vsyncpa [#allocation3 + $0x1], 1 }
 0x2cc   :  { %1642 = vsyncpa [#allocation6], 1 }
 0x2cd   :  { %1643 = vsyncpa [#allocation9], 1 }
 0x2ce   :  { %1644 = vsyncpa [#allocation4], 1 }
 0x2cf   :  { %1646 = vsyncpa [#allocation4 + $0x1], 1 }

</bundles_post_ra>
